<compile_context>
chip_gen: v7x
topology: tpu7x:2x2x1
jax: 0.10.0
libtpu: 0.0.40
codegen_flags: <defaults>
</compile_context>

<pallas_src>
import numpy as np
import jax
import jax.numpy as jnp
from jax.experimental import pallas as pl
from jax.experimental.pallas import tpu as pltpu

EPS = 1e-5
LANE = 128


def _round_up(v, m):
    return ((v + m - 1) // m) * m


def _vmem_limit_bytes():
    """Generation-aware VMEM limit: physical capacity minus headroom."""
    cap = 64 * 1024 * 1024
    try:
        info = pltpu.get_tpu_info()
        cap = int(getattr(info, "vmem_capacity_bytes", cap) or cap)
    except Exception:
        pass
    # ~108 MiB on v5e/v6e (128 MiB), ~54 MiB on v7x (64 MiB).
    return max(min(cap - 8 * 1024 * 1024, int(cap * 0.85)), 16 * 1024 * 1024)


def _choose_tile_batch(N, H, W, CP, P, c_bytes, vmem_budget):
    """Largest batch-tile (divisor of N) whose rough working set fits budget."""
    Hp, Wp = H + 2 * P, W + 2 * P
    w_bytes = 2 * 9 * CP * CP * c_bytes
    for tb in range(N, 0, -1):
        if N % tb:
            continue
        act = tb * H * W * CP * 4            # f32 activation tile
        pad = tb * Hp * Wp * CP * 4          # padded-activation scratch (f32)
        need = 8 * act + pad + w_bytes       # rough: dbl-buffered IO + temps
        if need <= vmem_budget:
            return tb
    return 1


def _accum_conv_taps(pad_ref, w_ref, TB, H, W, KH, KW, CP, compute_dtype):
    """Conv as KH*KW accumulated per-tap matmuls (no im2col slab).

    pad_ref: VMEM ref (TB, H+2P, W+2P, CP) f32, spatially zero-padded.
    w_ref  : VMEM ref (KH*KW, CP, CP) in compute_dtype.
    Returns a (TB*H*W, CP) f32 accumulator.
    """
    rows = TB * H * W
    acc = jnp.zeros((rows, CP), jnp.float32)
    for idx in range(KH * KW):               # static unrolled, KH*KW small
        dh, dw = idx // KW, idx % KW
        tap = pad_ref[:, dh:dh + H, dw:dw + W, :].reshape(rows, CP)
        acc = acc + jnp.dot(tap.astype(compute_dtype), w_ref[idx],
                            preferred_element_type=jnp.float32)
    return acc


def _make_conv1_kernel(TB, H, W, CP, KH, KW, compute_dtype):
    rows = TB * H * W

    def kernel(xs_ref, w1_ref, b1_ref, a1_ref, st1_ref):
        acc = _accum_conv_taps(xs_ref, w1_ref, TB, H, W, KH, KW, CP,
                               compute_dtype)
        a1 = acc + b1_ref[...]                               # (rows, CP) f32
        a1_ref[...] = a1.reshape(TB, H, W, CP)
        s = jnp.sum(a1, axis=0, keepdims=True)               # partial BN stats
        ss = jnp.sum(a1 * a1, axis=0, keepdims=True)
        st1_ref[...] = jnp.concatenate([s, ss], axis=0).reshape(1, 2, CP)

    return kernel


def _make_bn1_conv2_kernel(TB, H, W, CP, KH, KW, P, compute_dtype):
    rows = TB * H * W
    Hp, Wp = H + 2 * P, W + 2 * P

    def kernel(a1_ref, sc1_ref, w2_ref, b2_ref, a2_ref, st2_ref, y1pad_ref):
        a1 = a1_ref[...].reshape(rows, CP)
        # Folded BN1 affine (global scale/shift precomputed in wrapper) + ReLU.
        y1 = jnp.maximum(a1 * sc1_ref[0:1, :] + sc1_ref[1:2, :], 0.0)
        y1 = y1.reshape(TB, H, W, CP)

        # Spatial zero-padding: zero only the halo, then store the interior.
        zrow = jnp.zeros((TB, P, Wp, CP), jnp.float32)
        zcol = jnp.zeros((TB, H, P, CP), jnp.float32)
        y1pad_ref[:, 0:P, :, :] = zrow
        y1pad_ref[:, P + H:Hp, :, :] = zrow
        y1pad_ref[:, P:P + H, 0:P, :] = zcol
        y1pad_ref[:, P:P + H, P + W:Wp, :] = zcol
        y1pad_ref[:, P:P + H, P:P + W, :] = y1

        acc = _accum_conv_taps(y1pad_ref, w2_ref, TB, H, W, KH, KW, CP,
                               compute_dtype)
        a2 = acc + b2_ref[...]
        a2_ref[...] = a2.reshape(TB, H, W, CP)
        s = jnp.sum(a2, axis=0, keepdims=True)
        ss = jnp.sum(a2 * a2, axis=0, keepdims=True)
        st2_ref[...] = jnp.concatenate([s, ss], axis=0).reshape(1, 2, CP)

    return kernel


def _make_bn2_res_kernel(TB, H, W, CP):
    rows = TB * H * W

    def kernel(a2_ref, sc2_ref, res_ref, out_ref):
        a2 = a2_ref[...].reshape(rows, CP)
        y = a2 * sc2_ref[0:1, :] + sc2_ref[1:2, :]           # folded BN2
        y = y + res_ref[...].reshape(rows, CP)               # residual add
        out_ref[...] = jnp.maximum(y, 0.0).reshape(TB, H, W, CP)

    return kernel


def _pack_conv_weight(w_oihw, cp, dtype):
    """(Cout, Cin, KH, KW) -> (KH*KW, CP, CP), zero channel-padded."""
    cout, cin, kh, kw = w_oihw.shape
    w = jnp.transpose(w_oihw, (2, 3, 1, 0)).astype(jnp.float32)  # (KH,KW,Ci,Co)
    w = jnp.pad(w, ((0, 0), (0, 0), (0, cp - cin), (0, cp - cout)))
    return w.reshape(kh * kw, cp, cp).astype(dtype)


def _pack_vec(v, cp):
    return jnp.pad(v.astype(jnp.float32), (0, cp - v.shape[0])).reshape(1, cp)


def _bn_scale_shift(st_partial, gamma_p, beta_p, nhw):
    """Fold training-mode BN into per-channel (scale, shift) from tile stats."""
    s = jnp.sum(st_partial, axis=0)                       # (2, CP) [sum, sumsq]
    mean = s[0:1] / nhw
    var = jnp.maximum(s[1:2] / nhw - mean * mean, 0.0)    # clamp (cancellation)
    scale = gamma_p * jax.lax.rsqrt(var + EPS)
    shift = beta_p - mean * scale
    return jnp.concatenate([scale, shift], axis=0)        # (2, CP)


def res_block_forward(x_nchw, w1, b1, g1, be1, w2, b2, g2, be2, padding,
                      *, compute_dtype=jnp.bfloat16, tile_batch=None):
    """ResBlock forward. x_nchw: (N, C, H, W) f32; weights in PyTorch OIHW."""
    N, C, H, W = x_nchw.shape
    KH, KW = int(w1.shape[2]), int(w1.shape[3])
    P = int(padding)
    assert 2 * P == KH - 1 and 2 * P == KW - 1, "ResBlock requires same-size conv"

    CP = _round_up(max(C, LANE), LANE)                    # lane-dense channels
    Hp, Wp = H + 2 * P, W + 2 * P
    NHW = N * H * W
    c_bytes = jnp.dtype(compute_dtype).itemsize

    vmem_limit = _vmem_limit_bytes()
    if tile_batch is None:
        tile_batch = _choose_tile_batch(N, H, W, CP, P, c_bytes, vmem_limit // 2)
    TB = int(tile_batch)
    assert N % TB == 0, "tile_batch must divide N"
    n_tiles = N // TB

    # ---- wrapper-side layout glue (cheap XLA ops, no 9x im2col slab) ----
    x = jnp.transpose(x_nchw, (0, 2, 3, 1)).astype(jnp.float32)      # NHWC
    res = jnp.pad(x, ((0, 0), (0, 0), (0, 0), (0, CP - C)))          # (N,H,W,CP)
    xs = jnp.pad(res, ((0, 0), (P, P), (P, P), (0, 0)))              # spatial pad

    w1p = _pack_conv_weight(w1, CP, compute_dtype)
    w2p = _pack_conv_weight(w2, CP, compute_dtype)
    b1p, g1p, be1p = _pack_vec(b1, CP), _pack_vec(g1, CP), _pack_vec(be1, CP)
    b2p, g2p, be2p = _pack_vec(b2, CP), _pack_vec(g2, CP), _pack_vec(be2, CP)

    cparams = pltpu.CompilerParams(
        dimension_semantics=("parallel",), vmem_limit_bytes=vmem_limit)

    tile4 = lambda i: (i, 0, 0, 0)
    full3 = lambda i: (0, 0, 0)
    full2 = lambda i: (0, 0)

    act_spec = pl.BlockSpec((TB, H, W, CP), tile4)
    xs_spec = pl.BlockSpec((TB, Hp, Wp, CP), tile4)
    w_spec = pl.BlockSpec((KH * KW, CP, CP), full3)
    vec_spec = pl.BlockSpec((1, CP), full2)
    sc_spec = pl.BlockSpec((2, CP), full2)
    st_spec = pl.BlockSpec((1, 2, CP), lambda i: (i, 0, 0))

    act_shape = jax.ShapeDtypeStruct((N, H, W, CP), jnp.float32)
    st_shape = jax.ShapeDtypeStruct((n_tiles, 2, CP), jnp.float32)

    # ---- pass A: conv1 + bias, per-tile BN1 partial stats ----
    a1, st1 = pl.pallas_call(
        _make_conv1_kernel(TB, H, W, CP, KH, KW, compute_dtype),
        grid=(n_tiles,),
        in_specs=[xs_spec, w_spec, vec_spec],
        out_specs=(act_spec, st_spec),
        out_shape=(act_shape, st_shape),
        compiler_params=cparams,
    )(xs, w1p, b1p)

    sc1 = _bn_scale_shift(st1, g1p, be1p, float(NHW))

    # ---- pass B: bn1 + relu + pad + conv2 + bias, per-tile BN2 stats ----
    a2, st2 = pl.pallas_call(
        _make_bn1_conv2_kernel(TB, H, W, CP, KH, KW, P, compute_dtype),
        grid=(n_tiles,),
        in_specs=[act_spec, sc_spec, w_spec, vec_spec],
        out_specs=(act_spec, st_spec),
        out_shape=(act_shape, st_shape),
        scratch_shapes=[pltpu.VMEM((TB, Hp, Wp, CP), jnp.float32)],
        compiler_params=cparams,
    )(a1, sc1, w2p, b2p)

    sc2 = _bn_scale_shift(st2, g2p, be2p, float(NHW))

    # ---- pass C: bn2 + residual + relu (lane-dense output tiles) ----
    out = pl.pallas_call(
        _make_bn2_res_kernel(TB, H, W, CP),
        grid=(n_tiles,),
        in_specs=[act_spec, sc_spec, act_spec],
        out_specs=act_spec,
        out_shape=act_shape,
        compiler_params=cparams,
    )(a2, sc2, res)

    out = out[:, :, :, :C]                                 # drop channel pad
    return jnp.transpose(out, (0, 3, 1, 2))                # NHWC -> NCHW


def _ref_forward(x, w1, b1, g1, be1, w2, b2, g2, be2, padding):
    """Pure-JAX reference matching the PyTorch module (training-mode BN)."""
    def conv(x, w, b):
        y = jax.lax.conv_general_dilated(
            x, w, window_strides=(1, 1),
            padding=[(padding, padding), (padding, padding)],
            dimension_numbers=("NCHW", "OIHW", "NCHW"),
            precision=jax.lax.Precision.HIGHEST)
        return y + b[None, :, None, None]

    def bn(x, g, be):
        mean = x.mean(axis=(0, 2, 3), keepdims=True)
        var = ((x - mean) ** 2).mean(axis=(0, 2, 3), keepdims=True)
        return (x - mean) / jnp.sqrt(var + EPS) * g[None, :, None, None] \
            + be[None, :, None, None]

    y = jax.nn.relu(bn(conv(x, w1, b1), g1, be1))
    y = bn(conv(y, w2, b2), g2, be2) + x
    return jax.nn.relu(y)


if __name__ == "__main__":
    # Small shapes consistent with the module: bs=2, block_channels=8,
    # 8x8 board, kernel_size=3, padding=1.
    N, C, H, W = 2, 8, 8, 8
    KH = KW = 3
    P = 1

    key = jax.random.PRNGKey(0)
    kx, kw1, kb1, kw2, kb2 = jax.random.split(key, 5)

    x = jax.random.normal(kx, (N, C, H, W), jnp.float32)

    fan_in = C * KH * KW
    bound = 1.0 / float(np.sqrt(fan_in))
    w1 = jax.random.uniform(kw1, (C, C, KH, KW), jnp.float32, -bound, bound)
    b1 = jax.random.uniform(kb1, (C,), jnp.float32, -bound, bound)
    w2 = jax.random.uniform(kw2, (C, C, KH, KW), jnp.float32, -bound, bound)
    b2 = jax.random.uniform(kb2, (C,), jnp.float32, -bound, bound)
    g1 = jnp.ones((C,), jnp.float32); be1 = jnp.zeros((C,), jnp.float32)
    g2 = jnp.ones((C,), jnp.float32); be2 = jnp.zeros((C,), jnp.float32)

    ref = _ref_forward(x, w1, b1, g1, be1, w2, b2, g2, be2, P)

    # 1) f32 MXU operands: tight tolerance against the HIGHEST-precision ref.
    out_f32 = jax.block_until_ready(res_block_forward(
        x, w1, b1, g1, be1, w2, b2, g2, be2, P, compute_dtype=jnp.float32))
    np.testing.assert_allclose(np.asarray(out_f32), np.asarray(ref),
                               rtol=1e-4, atol=1e-4)

    # 2) bf16 MXU operands with f32 accumulation / f32 BN (default fast path).
    out_bf16 = jax.block_until_ready(res_block_forward(
        x, w1, b1, g1, be1, w2, b2, g2, be2, P))
    np.testing.assert_allclose(np.asarray(out_bf16), np.asarray(ref),
                               rtol=5e-2, atol=5e-2)

    # 3) Multi-tile path: grid > 1 exercises the partial-stat reduction.
    N2 = 4
    x2 = jax.random.normal(jax.random.PRNGKey(1), (N2, C, H, W), jnp.float32)
    ref2 = _ref_forward(x2, w1, b1, g1, be1, w2, b2, g2, be2, P)
    out2 = jax.block_until_ready(res_block_forward(
        x2, w1, b1, g1, be1, w2, b2, g2, be2, P,
        compute_dtype=jnp.float32, tile_batch=2))
    np.testing.assert_allclose(np.asarray(out2), np.asarray(ref2),
                               rtol=1e-4, atol=1e-4)

    print("KERNEL_OK")
</pallas_src>

<mosaic_0001>
module attributes {stable_mosaic.version = 11 : i64} {
  func.func @kernel(%arg0: i32, %arg1: memref<2x10x10x128xf32, #tpu.memory_space<vmem>>, %arg2: memref<9x128x128xf32, #tpu.memory_space<vmem>>, %arg3: memref<1x128xf32, #tpu.memory_space<vmem>>, %arg4: memref<2x8x8x128xf32, #tpu.memory_space<vmem>>, %arg5: memref<1x2x128xf32, #tpu.memory_space<vmem>>) attributes {dimension_semantics = [#tpu.dimension_semantics<parallel>], iteration_bounds = array<i64: 1>, scalar_prefetch = 0 : i64, scratch_operands = 0 : i64, tpu.core_type = #tpu.core_type<tc>, window_params = [{transform_indices = @transform_0, window_bounds = array<i64: 2, 10, 10, 128>}, {pipeline_mode = #tpu.pipeline_mode<synchronous>, transform_indices = @transform_1, window_bounds = array<i64: 9, 128, 128>}, {pipeline_mode = #tpu.pipeline_mode<synchronous>, transform_indices = @transform_2, window_bounds = array<i64: 1, 128>}, {transform_indices = @transform_3, window_bounds = array<i64: 2, 8, 8, 128>}, {transform_indices = @transform_4, window_bounds = array<i64: 1, 2, 128>}]} {
    %cst = arith.constant 0.000000e+00 : f32
    %0 = vector.broadcast %cst : f32 to vector<128x128xf32>
    %c0 = arith.constant 0 : index
    %c0_0 = arith.constant 0 : index
    %c0_1 = arith.constant 0 : index
    %c0_2 = arith.constant 0 : index
    %1 = vector.load %arg1[%c0, %c0_0, %c0_1, %c0_2] : memref<2x10x10x128xf32, #tpu.memory_space<vmem>>, vector<2x8x8x128xf32>
    %2 = vector.shape_cast %1 : vector<2x8x8x128xf32> to vector<128x128xf32>
    %c0_3 = arith.constant 0 : index
    %c0_4 = arith.constant 0 : index
    %c0_5 = arith.constant 0 : index
    %3 = vector.load %arg2[%c0_3, %c0_4, %c0_5] : memref<9x128x128xf32, #tpu.memory_space<vmem>>, vector<1x128x128xf32>
    %4 = vector.shape_cast %3 : vector<1x128x128xf32> to vector<128x128xf32>
    %cst_6 = arith.constant dense<0.000000e+00> : vector<128x128xf32>
    %5 = tpu.matmul %2, %4, %cst_6 {dimension_numbers = #tpu.dot_dimension_numbers<[1], [0], [0], [1], [0, 0, 1, 1], [], []>} : vector<128x128xf32>, vector<128x128xf32>, vector<128x128xf32> -> vector<128x128xf32>
    %6 = arith.addf %0, %5 : vector<128x128xf32>
    %c0_7 = arith.constant 0 : index
    %c0_8 = arith.constant 0 : index
    %c1 = arith.constant 1 : index
    %c0_9 = arith.constant 0 : index
    %7 = vector.load %arg1[%c0_7, %c0_8, %c1, %c0_9] : memref<2x10x10x128xf32, #tpu.memory_space<vmem>>, vector<2x8x8x128xf32>
    %8 = vector.shape_cast %7 : vector<2x8x8x128xf32> to vector<128x128xf32>
    %c1_10 = arith.constant 1 : index
    %c0_11 = arith.constant 0 : index
    %c0_12 = arith.constant 0 : index
    %9 = vector.load %arg2[%c1_10, %c0_11, %c0_12] : memref<9x128x128xf32, #tpu.memory_space<vmem>>, vector<1x128x128xf32>
    %10 = vector.shape_cast %9 : vector<1x128x128xf32> to vector<128x128xf32>
    %cst_13 = arith.constant dense<0.000000e+00> : vector<128x128xf32>
    %11 = tpu.matmul %8, %10, %cst_13 {dimension_numbers = #tpu.dot_dimension_numbers<[1], [0], [0], [1], [0, 0, 1, 1], [], []>} : vector<128x128xf32>, vector<128x128xf32>, vector<128x128xf32> -> vector<128x128xf32>
    %12 = arith.addf %6, %11 : vector<128x128xf32>
    %c0_14 = arith.constant 0 : index
    %c0_15 = arith.constant 0 : index
    %c2 = arith.constant 2 : index
    %c0_16 = arith.constant 0 : index
    %13 = vector.load %arg1[%c0_14, %c0_15, %c2, %c0_16] : memref<2x10x10x128xf32, #tpu.memory_space<vmem>>, vector<2x8x8x128xf32>
    %14 = vector.shape_cast %13 : vector<2x8x8x128xf32> to vector<128x128xf32>
    %c2_17 = arith.constant 2 : index
    %c0_18 = arith.constant 0 : index
    %c0_19 = arith.constant 0 : index
    %15 = vector.load %arg2[%c2_17, %c0_18, %c0_19] : memref<9x128x128xf32, #tpu.memory_space<vmem>>, vector<1x128x128xf32>
    %16 = vector.shape_cast %15 : vector<1x128x128xf32> to vector<128x128xf32>
    %cst_20 = arith.constant dense<0.000000e+00> : vector<128x128xf32>
    %17 = tpu.matmul %14, %16, %cst_20 {dimension_numbers = #tpu.dot_dimension_numbers<[1], [0], [0], [1], [0, 0, 1, 1], [], []>} : vector<128x128xf32>, vector<128x128xf32>, vector<128x128xf32> -> vector<128x128xf32>
    %18 = arith.addf %12, %17 : vector<128x128xf32>
    %c0_21 = arith.constant 0 : index
    %c1_22 = arith.constant 1 : index
    %c0_23 = arith.constant 0 : index
    %c0_24 = arith.constant 0 : index
    %19 = vector.load %arg1[%c0_21, %c1_22, %c0_23, %c0_24] : memref<2x10x10x128xf32, #tpu.memory_space<vmem>>, vector<2x8x8x128xf32>
    %20 = vector.shape_cast %19 : vector<2x8x8x128xf32> to vector<128x128xf32>
    %c3 = arith.constant 3 : index
    %c0_25 = arith.constant 0 : index
    %c0_26 = arith.constant 0 : index
    %21 = vector.load %arg2[%c3, %c0_25, %c0_26] : memref<9x128x128xf32, #tpu.memory_space<vmem>>, vector<1x128x128xf32>
    %22 = vector.shape_cast %21 : vector<1x128x128xf32> to vector<128x128xf32>
    %cst_27 = arith.constant dense<0.000000e+00> : vector<128x128xf32>
    %23 = tpu.matmul %20, %22, %cst_27 {dimension_numbers = #tpu.dot_dimension_numbers<[1], [0], [0], [1], [0, 0, 1, 1], [], []>} : vector<128x128xf32>, vector<128x128xf32>, vector<128x128xf32> -> vector<128x128xf32>
    %24 = arith.addf %18, %23 : vector<128x128xf32>
    %c0_28 = arith.constant 0 : index
    %c1_29 = arith.constant 1 : index
    %c1_30 = arith.constant 1 : index
    %c0_31 = arith.constant 0 : index
    %25 = vector.load %arg1[%c0_28, %c1_29, %c1_30, %c0_31] : memref<2x10x10x128xf32, #tpu.memory_space<vmem>>, vector<2x8x8x128xf32>
    %26 = vector.shape_cast %25 : vector<2x8x8x128xf32> to vector<128x128xf32>
    %c4 = arith.constant 4 : index
    %c0_32 = arith.constant 0 : index
    %c0_33 = arith.constant 0 : index
    %27 = vector.load %arg2[%c4, %c0_32, %c0_33] : memref<9x128x128xf32, #tpu.memory_space<vmem>>, vector<1x128x128xf32>
    %28 = vector.shape_cast %27 : vector<1x128x128xf32> to vector<128x128xf32>
    %cst_34 = arith.constant dense<0.000000e+00> : vector<128x128xf32>
    %29 = tpu.matmul %26, %28, %cst_34 {dimension_numbers = #tpu.dot_dimension_numbers<[1], [0], [0], [1], [0, 0, 1, 1], [], []>} : vector<128x128xf32>, vector<128x128xf32>, vector<128x128xf32> -> vector<128x128xf32>
    %30 = arith.addf %24, %29 : vector<128x128xf32>
    %c0_35 = arith.constant 0 : index
    %c1_36 = arith.constant 1 : index
    %c2_37 = arith.constant 2 : index
    %c0_38 = arith.constant 0 : index
    %31 = vector.load %arg1[%c0_35, %c1_36, %c2_37, %c0_38] : memref<2x10x10x128xf32, #tpu.memory_space<vmem>>, vector<2x8x8x128xf32>
    %32 = vector.shape_cast %31 : vector<2x8x8x128xf32> to vector<128x128xf32>
    %c5 = arith.constant 5 : index
    %c0_39 = arith.constant 0 : index
    %c0_40 = arith.constant 0 : index
    %33 = vector.load %arg2[%c5, %c0_39, %c0_40] : memref<9x128x128xf32, #tpu.memory_space<vmem>>, vector<1x128x128xf32>
    %34 = vector.shape_cast %33 : vector<1x128x128xf32> to vector<128x128xf32>
    %cst_41 = arith.constant dense<0.000000e+00> : vector<128x128xf32>
    %35 = tpu.matmul %32, %34, %cst_41 {dimension_numbers = #tpu.dot_dimension_numbers<[1], [0], [0], [1], [0, 0, 1, 1], [], []>} : vector<128x128xf32>, vector<128x128xf32>, vector<128x128xf32> -> vector<128x128xf32>
    %36 = arith.addf %30, %35 : vector<128x128xf32>
    %c0_42 = arith.constant 0 : index
    %c2_43 = arith.constant 2 : index
    %c0_44 = arith.constant 0 : index
    %c0_45 = arith.constant 0 : index
    %37 = vector.load %arg1[%c0_42, %c2_43, %c0_44, %c0_45] : memref<2x10x10x128xf32, #tpu.memory_space<vmem>>, vector<2x8x8x128xf32>
    %38 = vector.shape_cast %37 : vector<2x8x8x128xf32> to vector<128x128xf32>
    %c6 = arith.constant 6 : index
    %c0_46 = arith.constant 0 : index
    %c0_47 = arith.constant 0 : index
    %39 = vector.load %arg2[%c6, %c0_46, %c0_47] : memref<9x128x128xf32, #tpu.memory_space<vmem>>, vector<1x128x128xf32>
    %40 = vector.shape_cast %39 : vector<1x128x128xf32> to vector<128x128xf32>
    %cst_48 = arith.constant dense<0.000000e+00> : vector<128x128xf32>
    %41 = tpu.matmul %38, %40, %cst_48 {dimension_numbers = #tpu.dot_dimension_numbers<[1], [0], [0], [1], [0, 0, 1, 1], [], []>} : vector<128x128xf32>, vector<128x128xf32>, vector<128x128xf32> -> vector<128x128xf32>
    %42 = arith.addf %36, %41 : vector<128x128xf32>
    %c0_49 = arith.constant 0 : index
    %c2_50 = arith.constant 2 : index
    %c1_51 = arith.constant 1 : index
    %c0_52 = arith.constant 0 : index
    %43 = vector.load %arg1[%c0_49, %c2_50, %c1_51, %c0_52] : memref<2x10x10x128xf32, #tpu.memory_space<vmem>>, vector<2x8x8x128xf32>
    %44 = vector.shape_cast %43 : vector<2x8x8x128xf32> to vector<128x128xf32>
    %c7 = arith.constant 7 : index
    %c0_53 = arith.constant 0 : index
    %c0_54 = arith.constant 0 : index
    %45 = vector.load %arg2[%c7, %c0_53, %c0_54] : memref<9x128x128xf32, #tpu.memory_space<vmem>>, vector<1x128x128xf32>
    %46 = vector.shape_cast %45 : vector<1x128x128xf32> to vector<128x128xf32>
    %cst_55 = arith.constant dense<0.000000e+00> : vector<128x128xf32>
    %47 = tpu.matmul %44, %46, %cst_55 {dimension_numbers = #tpu.dot_dimension_numbers<[1], [0], [0], [1], [0, 0, 1, 1], [], []>} : vector<128x128xf32>, vector<128x128xf32>, vector<128x128xf32> -> vector<128x128xf32>
    %48 = arith.addf %42, %47 : vector<128x128xf32>
    %c0_56 = arith.constant 0 : index
    %c2_57 = arith.constant 2 : index
    %c2_58 = arith.constant 2 : index
    %c0_59 = arith.constant 0 : index
    %49 = vector.load %arg1[%c0_56, %c2_57, %c2_58, %c0_59] : memref<2x10x10x128xf32, #tpu.memory_space<vmem>>, vector<2x8x8x128xf32>
    %50 = vector.shape_cast %49 : vector<2x8x8x128xf32> to vector<128x128xf32>
    %c8 = arith.constant 8 : index
    %c0_60 = arith.constant 0 : index
    %c0_61 = arith.constant 0 : index
    %51 = vector.load %arg2[%c8, %c0_60, %c0_61] : memref<9x128x128xf32, #tpu.memory_space<vmem>>, vector<1x128x128xf32>
    %52 = vector.shape_cast %51 : vector<1x128x128xf32> to vector<128x128xf32>
    %cst_62 = arith.constant dense<0.000000e+00> : vector<128x128xf32>
    %53 = tpu.matmul %50, %52, %cst_62 {dimension_numbers = #tpu.dot_dimension_numbers<[1], [0], [0], [1], [0, 0, 1, 1], [], []>} : vector<128x128xf32>, vector<128x128xf32>, vector<128x128xf32> -> vector<128x128xf32>
    %54 = arith.addf %48, %53 : vector<128x128xf32>
    %c0_63 = arith.constant 0 : index
    %c0_64 = arith.constant 0 : index
    %55 = vector.load %arg3[%c0_63, %c0_64] : memref<1x128xf32, #tpu.memory_space<vmem>>, vector<1x128xf32>
    %56 = vector.broadcast %55 : vector<1x128xf32> to vector<128x128xf32>
    %57 = arith.addf %54, %56 : vector<128x128xf32>
    %58 = vector.shape_cast %57 : vector<128x128xf32> to vector<2x8x8x128xf32>
    %c0_65 = arith.constant 0 : index
    %c0_66 = arith.constant 0 : index
    %c0_67 = arith.constant 0 : index
    %c0_68 = arith.constant 0 : index
    %59 = vector.load %arg4[%c0_65, %c0_66, %c0_67, %c0_68] : memref<2x8x8x128xf32, #tpu.memory_space<vmem>>, vector<2x8x8x128xf32>
    tpu.vector_store %arg4[%c0_65, %c0_66, %c0_67, %c0_68], %58 {strides = array<i32>} : memref<2x8x8x128xf32, #tpu.memory_space<vmem>>, vector<2x8x8x128xf32>,
    %cst_69 = arith.constant dense<0.000000e+00> : vector<128xf32>
    %60 = vector.multi_reduction <add>, %57, %cst_69 [0] : vector<128x128xf32> to vector<128xf32>
    %61 = vector.shape_cast %60 : vector<128xf32> to vector<1x128xf32>
    %62 = arith.mulf %57, %57 : vector<128x128xf32>
    %cst_70 = arith.constant dense<0.000000e+00> : vector<128xf32>
    %63 = vector.multi_reduction <add>, %62, %cst_70 [0] : vector<128x128xf32> to vector<128xf32>
    %64 = vector.shape_cast %63 : vector<128xf32> to vector<1x128xf32>
    %65 = tpu.concatenate %61, %64 in 0 : vector<1x128xf32>, vector<1x128xf32> -> vector<2x128xf32>
    %66 = vector.shape_cast %65 : vector<2x128xf32> to vector<1x2x128xf32>
    %c0_71 = arith.constant 0 : index
    %c0_72 = arith.constant 0 : index
    %c0_73 = arith.constant 0 : index
    %67 = vector.load %arg5[%c0_71, %c0_72, %c0_73] : memref<1x2x128xf32, #tpu.memory_space<vmem>>, vector<1x2x128xf32>
    tpu.vector_store %arg5[%c0_71, %c0_72, %c0_73], %66 {strides = array<i32>} : memref<1x2x128xf32, #tpu.memory_space<vmem>>, vector<1x2x128xf32>,
    return
  }
  func.func @transform_0(%arg0: i32) -> (i32, i32, i32, i32) {
    %c0_i32 = arith.constant 0 : i32
    %c0_i32_0 = arith.constant 0 : i32
    %c0_i32_1 = arith.constant 0 : i32
    %c0_i32_2 = arith.constant 0 : i32
    return %arg0, %c0_i32, %c0_i32_0, %c0_i32_1 : i32, i32, i32, i32
  }
  func.func @transform_1(%arg0: i32) -> (i32, i32, i32) {
    %c0_i32 = arith.constant 0 : i32
    %c0_i32_0 = arith.constant 0 : i32
    %c0_i32_1 = arith.constant 0 : i32
    %c0_i32_2 = arith.constant 0 : i32
    return %c0_i32, %c0_i32_0, %c0_i32_1 : i32, i32, i32
  }
  func.func @transform_2(%arg0: i32) -> (i32, i32) {
    %c0_i32 = arith.constant 0 : i32
    %c0_i32_0 = arith.constant 0 : i32
    %c0_i32_1 = arith.constant 0 : i32
    return %c0_i32, %c0_i32_0 : i32, i32
  }
  func.func @transform_3(%arg0: i32) -> (i32, i32, i32, i32) {
    %c0_i32 = arith.constant 0 : i32
    %c0_i32_0 = arith.constant 0 : i32
    %c0_i32_1 = arith.constant 0 : i32
    %c0_i32_2 = arith.constant 0 : i32
    return %arg0, %c0_i32, %c0_i32_0, %c0_i32_1 : i32, i32, i32, i32
  }
  func.func @transform_4(%arg0: i32) -> (i32, i32, i32) {
    %c0_i32 = arith.constant 0 : i32
    %c0_i32_0 = arith.constant 0 : i32
    %c0_i32_1 = arith.constant 0 : i32
    return %arg0, %c0_i32, %c0_i32_0 : i32, i32, i32
  }
}

</mosaic_0001>

<bundles_post_ra>
// kernel: tpu_custom_call.1
= control target key start
LH: loop header
LB: loop body
LE: loop exit
PB: predicated region body
PF: predicated region fallthrough
CT: control target
= control target key end

     0   :  { %10 = vsyncpa [#allocation3], 0  ;;  %s3823_s0 = inlined_call_operand.vmem [shape: f32[2,10,10,128], index: 0, kind: input, shape index: {}]   ;;  %s3824_s1 = inlined_call_operand.hbm [shape: f32[9,128,128], index: 1, kind: input, shape index: {}]   ;;  %s3825_s2 = inlined_call_operand.vmem [shape: f32[1,128], index: 2, kind: input, shape index: {}]   ;;  %s3826_s3 = inlined_call_operand.hbm [shape: f32[2,8,8,128], index: 3, kind: output, shape index: {0}]   ;;  %s3827_s4 = inlined_call_operand.hbm [shape: f32[1,2,128], index: 4, kind: output, shape index: {1}]  }
   0x1   :  { %11 = vsyncpa [#allocation4], 0 }
   0x2   :  { %12 = vsyncpa [#allocation7], 0  ;;  %s3276_s15 = smov [#allocation2]   ;;  %s3204_s19 = scalar_lea.hbm %s3824_s1, 18432 }
   0x3   :  { %s20_s16 = sshll.u32 %s3276_s15, 4  ;;  %p3205_p0 = scmp.ne.s32.totalorder %s3824_s1, %s3204_s19  ;;  %s21_s16 = int_to_ptr.vmem [resolvable:$true] %s20_s16 }
   0x4   :  { %p3208_p1 = scmp.lt.u32.totalorder %s3204_s19, %s3824_s1 }
   0x6   :  { %p3210_p2 = pnand %p3208_p1, %p3205_p0 }
   0x8   :  { %3213 = shalt.err (!%p3210_p2)
}
   0x9   :  { %s3214_s24 = scalar_lea.vmem %s21_s16, 18432  ;;  %p3219_p4 = scmp.lt.s32.totalorder %s21_s16, %s21_s16 }
   0xa   :  { %p3215_p3 = scmp.ne.s32.totalorder %s21_s16, %s3214_s24  ;;  %p3220_p5 = scmp.lt.s32.totalorder %s3214_s24, %s3214_s24 }
   0xc   :  { %p3221_p6 = por %p3220_p5, %p3219_p4 }
   0xe   :  { %p3222_p7 = pnand %p3221_p6, %p3215_p3 }
  0x10   :  { %3225 = shalt.err (!%p3222_p7)
}
  0x11   :  { %s3277_s25 = smov 128   ;;  %s3278_s26 = smov 8  }
  0x12   :  { %26 = dma.hbm_to_vmem [thread:$0]  %s3824_s1, 18432, %s21_s16, [#allocation3], %s3277_s25, %s3277_s25, %s3278_s26  }
  0x13   :  { %3270 = dma.done.wait [#allocation3], 18432  }
  0x14   :  { %3271 = vsyncadd [#allocation3], 4294948864  ;;  %v81_v0 = vld [vmem:[#allocation2 + $0x80] sm:$0xff]  ;;  %v82_v1 = vld [vmem:[#allocation2 + $0x88] sm:$0xff] }
  0x15   :  { %v793_v2 = vld [vmem:[#allocation2 + $0x200] sm:$0xff]  ;;  %v2767_v3 = vpack.c.bf16 %v82_v1, %v81_v0  ;;  %v794_v4 = vld [vmem:[#allocation2 + $0x208] sm:$0xff]  ;;  %v83_v5 = vld [vmem:[#allocation2 + $0x90] sm:$0xff] }
  0x16   :  { %v84_v6 = vld [vmem:[#allocation2 + $0x98] sm:$0xff]  ;;  %v2895_v7 = vpack.c.bf16 %v794_v4, %v793_v2  ;;  %v795_v9 = vld [vmem:[#allocation2 + $0x210] sm:$0xff]  ;;  %v85_v11 = vld [vmem:[#allocation2 + $0xa0] sm:$0xff] }
  0x17   :  { %v2771_v8 = vpack.c.bf16 %v84_v6, %v83_v5  ;;  %v796_v10 = vld [vmem:[#allocation2 + $0x218] sm:$0xff]  ;;  %2768 = vmatprep.subr.bf16.mxu1 %v2767_v3  ;;  %v86_v13 = vld [vmem:[#allocation2 + $0xa8] sm:$0xff]  ;;  %v797_v14 = vld [vmem:[#allocation2 + $0x220] sm:$0xff] }
  0x18   :  { %v2899_v12 = vpack.c.bf16 %v796_v10, %v795_v9  ;;  %v798_v15 = vld [vmem:[#allocation2 + $0x228] sm:$0xff]  ;;  %2896 = vmatprep.subr.bf16.mxu0 %v2895_v7  ;;  %2770 = vmatpush3.bf16.msra.mxu1 %v2767_v3  ;;  %v2775_v16 = vpack.c.bf16 %v86_v13, %v85_v11  ;;  %v87_v18 = vld [vmem:[#allocation2 + $0xb0] sm:$0xff]  ;;  %v88_v19 = vld [vmem:[#allocation2 + $0xb8] sm:$0xff] }
  0x19   :  { %2898 = vmatpush3.bf16.msra.mxu0 %v2895_v7  ;;  %2772 = vmatprep.subr.bf16.mxu1 %v2771_v8  ;;  %v2903_v17 = vpack.c.bf16 %v798_v15, %v797_v14  ;;  %v799_v20 = vld [vmem:[#allocation2 + $0x230] sm:$0xff]  ;;  %v800_v21 = vld [vmem:[#allocation2 + $0x238] sm:$0xff]  ;;  %v2779_v22 = vpack.c.bf16 %v88_v19, %v87_v18  ;;  %v89_v24 = vld [vmem:[#allocation2 + $0xc0] sm:$0xff] }
  0x1a   :  { %2900 = vmatprep.subr.bf16.mxu0 %v2899_v12  ;;  %v2907_v23 = vpack.c.bf16 %v800_v21, %v799_v20  ;;  %v90_v25 = vld [vmem:[#allocation2 + $0xc8] sm:$0xff]  ;;  %v801_v27 = vld [vmem:[#allocation2 + $0x240] sm:$0xff]  ;;  %v1894_v29 = vld [vmem:[%s3823_s0 + $0x11] sm:$0xff] }
  0x1b   :  { %v64_v26 = vld [vmem:[%s3823_s0 + $0x1] sm:$0xff]  ;;  %2519 = vmatprep.mubr.f32.mxu0 %v1894_v29  ;;  %v2783_v30 = vpack.c.bf16 %v90_v25, %v89_v24  ;;  %v91_v32 = vld [vmem:[#allocation2 + $0xd0] sm:$0xff]  ;;  %v92_v33 = vld [vmem:[#allocation2 + $0xd8] sm:$0xff] }
  0x1c   :  { %2774 = vmatpush3.bf16.msra.mxu1 %v2771_v8  ;;  %v802_v28 = vld [vmem:[#allocation2 + $0x248] sm:$0xff]  ;;  %2295 = vmatprep.mubr.f32.mxu1 %v64_v26  ;;  %v803_v34 = vld [vmem:[#allocation2 + $0x250] sm:$0xff]  ;;  %v804_v35 = vld [vmem:[#allocation2 + $0x258] sm:$0xff]  ;;  %v2787_v36 = vpack.c.bf16 %v92_v33, %v91_v32 }
  0x1d   :  { %2902 = vmatpush3.bf16.msra.mxu0 %v2899_v12  ;;  %2776 = vmatprep.subr.bf16.mxu1 %v2775_v16  ;;  %v2911_v31 = vpack.c.bf16 %v802_v28, %v801_v27  ;;  %v2915_v37 = vpack.c.bf16 %v804_v35, %v803_v34  ;;  %v93_v38 = vld [vmem:[#allocation2 + $0xe0] sm:$0xff]  ;;  %v94_v39 = vld [vmem:[#allocation2 + $0xe8] sm:$0xff]  ;;  %v95_v44 = vld [vmem:[#allocation2 + $0xf0] sm:$0xff] }
  0x1e   :  { %2904 = vmatprep.subr.bf16.mxu0 %v2903_v17  ;;  %v805_v40 = vld [vmem:[#allocation2 + $0x260] sm:$0xff]  ;;  %v806_v41 = vld [vmem:[#allocation2 + $0x268] sm:$0xff]  ;;  %v2791_v42 = vpack.c.bf16 %v94_v39, %v93_v38  ;;  %v96_v45 = vld [vmem:[#allocation2 + $0xf8] sm:$0xff] }
  0x1f   :  { %v2919_v43 = vpack.c.bf16 %v806_v41, %v805_v40  ;;  %v807_v46 = vld [vmem:[#allocation2 + $0x270] sm:$0xff]  ;;  %v808_v47 = vld [vmem:[#allocation2 + $0x278] sm:$0xff]  ;;  %v2795_v48 = vpack.c.bf16 %v96_v45, %v95_v44  ;;  %v48_v50 = vld [vmem:[#allocation2] sm:$0xff] }
  0x20   :  { %2778 = vmatpush3.bf16.msra.mxu1 %v2775_v16  ;;  %v2923_v49 = vpack.c.bf16 %v808_v47, %v807_v46  ;;  %v49_v51 = vld [vmem:[#allocation2 + $0x8] sm:$0xff]  ;;  %v987_v52 = vld [vmem:[#allocation2 + $0x280] sm:$0xff]  ;;  %v50_v56 = vld [vmem:[#allocation2 + $0x10] sm:$0xff] }
  0x21   :  { %2906 = vmatpush3.bf16.msra.mxu0 %v2903_v17  ;;  %2780 = vmatprep.subr.bf16.mxu1 %v2779_v22  ;;  %v988_v53 = vld [vmem:[#allocation2 + $0x288] sm:$0xff]  ;;  %v2799_v54 = vpack.c.bf16 %v49_v51, %v48_v50  ;;  %v51_v57 = vld [vmem:[#allocation2 + $0x18] sm:$0xff]  ;;  %v989_v58 = vld [vmem:[#allocation2 + $0x290] sm:$0xff] }
  0x22   :  { %2908 = vmatprep.subr.bf16.mxu0 %v2907_v23  ;;  %v2927_v55 = vpack.c.bf16 %v988_v53, %v987_v52  ;;  %v990_v59 = vld [vmem:[#allocation2 + $0x298] sm:$0xff]  ;;  %v3330_v60 = vld [vmem:[%s3823_s0 + $0x21] sm:$0xff]  ;;  %v2803_v61 = vpack.c.bf16 %v51_v57, %v50_v56  ;;  %v54_v8 = vld [vmem:[#allocation2 + $0x30] sm:$0xff] }
  0x23   :  { %v3335_v62 = vld [vmem:[%s3823_s0 + $0x31] sm:$0xff]  ;;  %v2931_v63 = vpack.c.bf16 %v990_v59, %v989_v58  ;;  %v52_v0 = vld [vmem:[#allocation2 + $0x20] sm:$0xff]  ;;  %v53_v1 = vld [vmem:[#allocation2 + $0x28] sm:$0xff] }
  0x24   :  { %2782 = vmatpush3.bf16.msra.mxu1 %v2779_v22  ;;  %v991_v2 = vld [vmem:[#allocation2 + $0x2a0] sm:$0xff]  ;;  %v992_v3 = vld [vmem:[#allocation2 + $0x2a8] sm:$0xff]  ;;  %v2807_v5 = vpack.c.bf16 %v53_v1, %v52_v0  ;;  %v3349_v6 = vld [vmem:[%s3823_s0 + $0x51] sm:$0xff] }
  0x25   :  { %2910 = vmatpush3.bf16.msra.mxu0 %v2907_v23  ;;  %2784 = vmatprep.subr.bf16.mxu1 %v2783_v30  ;;  %v3342_v4 = vld [vmem:[%s3823_s0 + $0x41] sm:$0xff]  ;;  %v2935_v7 = vpack.c.bf16 %v992_v3, %v991_v2  ;;  %v55_v9 = vld [vmem:[#allocation2 + $0x38] sm:$0xff]  ;;  %v993_v10 = vld [vmem:[#allocation2 + $0x2b0] sm:$0xff] }
  0x26   :  { %2912 = vmatprep.subr.bf16.mxu0 %v2911_v31  ;;  %v994_v11 = vld [vmem:[#allocation2 + $0x2b8] sm:$0xff]  ;;  %v3356_v12 = vld [vmem:[%s3823_s0 + $0x61] sm:$0xff]  ;;  %v2811_v13 = vpack.c.bf16 %v55_v9, %v54_v8  ;;  %v58_v25 = vld [vmem:[#allocation2 + $0x50] sm:$0xff] }
  0x27   :  { %v3363_v14 = vld [vmem:[%s3823_s0 + $0x71] sm:$0xff]  ;;  %v2939_v15 = vpack.c.bf16 %v994_v11, %v993_v10  ;;  %v56_v16 = vld [vmem:[#allocation2 + $0x40] sm:$0xff]  ;;  %v57_v17 = vld [vmem:[#allocation2 + $0x48] sm:$0xff] }
  0x28   :  { %2786 = vmatpush3.bf16.msra.mxu1 %v2783_v30  ;;  %v995_v18 = vld [vmem:[#allocation2 + $0x2c0] sm:$0xff]  ;;  %v996_v19 = vld [vmem:[#allocation2 + $0x2c8] sm:$0xff]  ;;  %v2815_v22 = vpack.c.bf16 %v57_v17, %v56_v16  ;;  %v1902_v23 = vld [vmem:[%s3823_s0 + $0xb1] sm:$0xff] }
  0x29   :  { %2914 = vmatpush3.bf16.msra.mxu0 %v2911_v31  ;;  %2788 = vmatprep.subr.bf16.mxu1 %v2787_v36  ;;  %v3370_v20 = vld [vmem:[%s3823_s0 + $0x81] sm:$0xff]  ;;  %v2943_v24 = vpack.c.bf16 %v996_v19, %v995_v18  ;;  %v59_v26 = vld [vmem:[#allocation2 + $0x58] sm:$0xff]  ;;  %v997_v27 = vld [vmem:[#allocation2 + $0x2d0] sm:$0xff] }
  0x2a   :  { %2916 = vmatprep.subr.bf16.mxu0 %v2915_v37  ;;  %v72_v21 = vld [vmem:[%s3823_s0 + $0xa1] sm:$0xff]  ;;  %v998_v28 = vld [vmem:[#allocation2 + $0x2d8] sm:$0xff]  ;;  %v2819_v30 = vpack.c.bf16 %v59_v26, %v58_v25  ;;  %v62_v41 = vld [vmem:[#allocation2 + $0x70] sm:$0xff] }
  0x2b   :  { %v3389_v31 = vld [vmem:[%s3823_s0 + $0xd1] sm:$0xff]  ;;  %v2947_v32 = vpack.c.bf16 %v998_v28, %v997_v27  ;;  %v60_v33 = vld [vmem:[#allocation2 + $0x60] sm:$0xff]  ;;  %v61_v34 = vld [vmem:[#allocation2 + $0x68] sm:$0xff] }
  0x2c   :  { %2790 = vmatpush3.bf16.msra.mxu1 %v2787_v36  ;;  %v999_v35 = vld [vmem:[#allocation2 + $0x2e0] sm:$0xff]  ;;  %v1000_v36 = vld [vmem:[#allocation2 + $0x2e8] sm:$0xff]  ;;  %v2823_v38 = vpack.c.bf16 %v61_v34, %v60_v33  ;;  %v3403_v39 = vld [vmem:[%s3823_s0 + $0xf1] sm:$0xff] }
  0x2d   :  { %2918 = vmatpush3.bf16.msra.mxu0 %v2915_v37  ;;  %2792 = vmatprep.subr.bf16.mxu1 %v2791_v42  ;;  %v3396_v37 = vld [vmem:[%s3823_s0 + $0xe1] sm:$0xff]  ;;  %v2951_v40 = vpack.c.bf16 %v1000_v36, %v999_v35  ;;  %v1002_v44 = vld [vmem:[#allocation2 + $0x2f8] sm:$0xff]  ;;  %v406_v58 = vld [vmem:[#allocation2 + $0x110] sm:$0xff] }
  0x2e   :  { %2920 = vmatprep.subr.bf16.mxu0 %v2919_v43  ;;  %v3410_v45 = vld [vmem:[%s3823_s0 + $0x101] sm:$0xff]  ;;  %v3417_v47 = vld [vmem:[%s3823_s0 + $0x111] sm:$0xff] }
  0x2f   :  { %v405_v50 = vld [vmem:[#allocation2 + $0x108] sm:$0xff]  ;;  %v1182_v51 = vld [vmem:[#allocation2 + $0x300] sm:$0xff]  ;;  %v3434_v56 = vld [vmem:[%s3823_s0 + $0x12] sm:$0xff] }
  0x30   :  { %2794 = vmatpush3.bf16.msra.mxu1 %v2791_v42  ;;  %v63_v42 = vld [vmem:[#allocation2 + $0x78] sm:$0xff]  ;;  %v1183_v52 = vld [vmem:[#allocation2 + $0x308] sm:$0xff]  ;;  %v3451_v2 = vld [vmem:[%s3823_s0 + $0x20] sm:$0xff] }
  0x31   :  { %2922 = vmatpush3.bf16.msra.mxu0 %v2919_v43  ;;  %2796 = vmatprep.subr.bf16.mxu1 %v2795_v48  ;;  %v1001_v43 = vld [vmem:[#allocation2 + $0x2f0] sm:$0xff]  ;;  %v2827_v46 = vpack.c.bf16 %v63_v42, %v62_v41  ;;  %v3424_v53 = vld [vmem:[%s3823_s0 + $0x121] sm:$0xff]  ;;  %v2959_v57 = vpack.c.bf16 %v1183_v52, %v1182_v51  ;;  %v407_v59 = vld [vmem:[#allocation2 + $0x118] sm:$0xff] }
  0x32   :  { %2924 = vmatprep.subr.bf16.mxu0 %v2923_v49  ;;  %v1185_v0 = vld [vmem:[#allocation2 + $0x318] sm:$0xff]  ;;  %v3445_v1 = vld [vmem:[%s3823_s0 + $0x22] sm:$0xff]  ;;  %v2835_v3 = vpack.c.bf16 %v407_v59, %v406_v58  ;;  %v3463_v10 = vld [vmem:[%s3823_s0 + $0x30] sm:$0xff] }
  0x33   :  { %v408_v8 = vld [vmem:[#allocation2 + $0x120] sm:$0xff]  ;;  %v409_v9 = vld [vmem:[#allocation2 + $0x128] sm:$0xff]  ;;  %v3481_v18 = vld [vmem:[%s3823_s0 + $0x52] sm:$0xff] }
  0x34   :  { %2798 = vmatpush3.bf16.msra.mxu1 %v2795_v48  ;;  %v2955_v48 = vpack.c.bf16 %v1002_v44, %v1001_v43  ;;  %v1186_v11 = vld [vmem:[#allocation2 + $0x320] sm:$0xff]  ;;  %v2839_v17 = vpack.c.bf16 %v409_v9, %v408_v8  ;;  %v1189_v25 = vld [vmem:[#allocation2 + $0x338] sm:$0xff]  ;;  %v413_v34 = vld [vmem:[#allocation2 + $0x148] sm:$0xff] }
  0x35   :  { %2926 = vmatpush3.bf16.msra.mxu0 %v2923_v49  ;;  %2800 = vmatprep.subr.bf16.mxu1 %v2799_v54  ;;  %v404_v49 = vld [vmem:[#allocation2 + $0x100] sm:$0xff]  ;;  %v3511_v35 = vld [vmem:[%s3823_s0 + $0x70] sm:$0xff]  ;;  %v1193_v51 = vld [vmem:[#allocation2 + $0x358] sm:$0xff] }
  0x36   :  { %2928 = vmatprep.subr.bf16.mxu0 %v2927_v55  ;;  %v3475_v16 = vld [vmem:[%s3823_s0 + $0x40] sm:$0xff]  ;;  %v3527_v43 = vld [vmem:[%s3823_s0 + $0xb2] sm:$0xff] }
  0x37   :  { %2296 = vmatmul.mubr.f32.vlgmr.msra.gmra.mrb[0].mxu1 %v1894_v29  ;;  %v3384_v29 = vld [vmem:[%s3823_s0 + $0xc1] sm:$0xff] }
  0x38   :  { %2520 = vmatmul.mubr.f32.vlgmr.msra.gmra.mrb[0].mxu0 %v3330_v60  ;;  %2802 = vmatpush3.bf16.msra.mxu1 %v2799_v54  ;;  %v32_v54 = vld [vmem:[%s3823_s0] sm:$0xff] }
  0x39   :  { %2930 = vmatpush3.bf16.msra.mxu0 %v2927_v55  ;;  %2298 = vmatprep.mubr.f32.mxu1 %v3330_v60  ;;  %v2831_v55 = vpack.c.bf16 %v405_v50, %v404_v49  ;;  %v3493_v26 = vld [vmem:[%s3823_s0 + $0x62] sm:$0xff]  ;;  %v3533_v49 = vld [vmem:[%s3823_s0 + $0xb0] sm:$0xff] }
  0x3a   :  { %2522 = vmatprep.mubr.f32.mxu0 %v3335_v62  ;;  %2804 = vmatprep.subr.bf16.mxu1 %v2803_v61  ;;  %v3499_v27 = vld [vmem:[%s3823_s0 + $0x60] sm:$0xff]  ;;  %v1192_v50 = vld [vmem:[#allocation2 + $0x350] sm:$0xff] }
  0x3b   :  { %2299 = vmatmul.mubr.f32.gmra.mrb[2].mxu1 %v3335_v62  ;;  %2932 = vmatprep.subr.bf16.mxu0 %v2931_v63  ;;  %v412_v33 = vld [vmem:[#allocation2 + $0x140] sm:$0xff]  ;;  %v2979_v58 = vpack.c.bf16 %v1193_v51, %v1192_v50 }
  0x3c   :  { %2523 = vmatmul.mubr.f32.gmra.mrb[2].mxu0 %v3342_v4  ;;  %2806 = vmatpush3.bf16.msra.mxu1 %v2803_v61  ;;  %v3440_v61 = vld [vmem:[%s3823_s0 + $0x10] sm:$0xff]  ;;  %v1190_v36 = vld [vmem:[#allocation2 + $0x340] sm:$0xff]  ;;  %v2847_v42 = vpack.c.bf16 %v413_v34, %v412_v33 }
  0x3d   :  { %2934 = vmatpush3.bf16.msra.mxu0 %v2931_v63  ;;  %2301 = vmatprep.mubr.f32.mxu1 %v3342_v4  ;;  %v1184_v63 = vld [vmem:[#allocation2 + $0x310] sm:$0xff]  ;;  %v40_v41 = vld [vmem:[%s3823_s0 + $0xa0] sm:$0xff] }
  0x3e   :  { %2525 = vmatprep.mubr.f32.mxu0 %v3349_v6  ;;  %2808 = vmatprep.subr.bf16.mxu1 %v2807_v5  ;;  %v3538_v52 = vld [vmem:[%s3823_s0 + $0xc2] sm:$0xff]  ;;  %v3598_v34 = vld [vmem:[%s3823_s0 + $0x112] sm:$0xff] }
  0x3f   :  { %2302 = vmatmul.mubr.f32.gmra.mrb[4].mxu1 %v3349_v6  ;;  %2936 = vmatprep.subr.bf16.mxu0 %v2935_v7  ;;  %v416_v59 = vld [vmem:[#allocation2 + $0x160] sm:$0xff] }
  0x40   :  { %2526 = vmatmul.mubr.f32.gmra.mrb[4].mxu0 %v3356_v12  ;;  %2810 = vmatpush3.bf16.msra.mxu1 %v2807_v5  ;;  %v3457_v5 = vld [vmem:[%s3823_s0 + $0x32] sm:$0xff]  ;;  %v3562_v8 = vld [vmem:[%s3823_s0 + $0xe2] sm:$0xff] }
  0x41   :  { %2938 = vmatpush3.bf16.msra.mxu0 %v2935_v7  ;;  %2304 = vmatprep.mubr.f32.mxu1 %v3356_v12  ;;  %v2963_v7 = vpack.c.bf16 %v1185_v0, %v1184_v63  ;;  %v417_v63 = vld [vmem:[#allocation2 + $0x168] sm:$0xff]  ;;  %v3556_v0 = vld [vmem:[%s3823_s0 + $0xd0] sm:$0xff]  ;;  %v3568_v9 = vld [vmem:[%s3823_s0 + $0xe0] sm:$0xff] }
  0x42   :  { %2528 = vmatprep.mubr.f32.mxu0 %v3363_v14  ;;  %2812 = vmatprep.subr.bf16.mxu1 %v2811_v13  ;;  %v387_v50 = vld [vmem:[%s3823_s0 + $0x2] sm:$0xff] }
  0x43   :  { %2305 = vmatmul.mubr.f32.gmra.mrb[6].mxu1 %v3363_v14  ;;  %2940 = vmatprep.subr.bf16.mxu0 %v2939_v15 }
  0x44   :  { %2529 = vmatmul.mubr.f32.gmra.mrb[6].mxu0 %v3370_v20  ;;  %2814 = vmatpush3.bf16.msra.mxu1 %v2811_v13  ;;  %v1187_v13 = vld [vmem:[#allocation2 + $0x328] sm:$0xff] }
  0x45   :  { %2942 = vmatpush3.bf16.msra.mxu0 %v2939_v15  ;;  %2307 = vmatprep.mubr.f32.mxu1 %v72_v21  ;;  %v3469_v15 = vld [vmem:[%s3823_s0 + $0x42] sm:$0xff]  ;;  %v2967_v19 = vpack.c.bf16 %v1187_v13, %v1186_v11  ;;  %v410_v21 = vld [vmem:[#allocation2 + $0x130] sm:$0xff]  ;;  %v2855_v11 = vpack.c.bf16 %v417_v63, %v416_v59  ;;  %v602_v59 = vld [vmem:[#allocation2 + $0x198] sm:$0xff] }
  0x46   :  { %2531 = vmatprep.mubr.f32.mxu0 %v1902_v23  ;;  %2816 = vmatprep.subr.bf16.mxu1 %v2815_v22  ;;  %v3574_v13 = vld [vmem:[%s3823_s0 + $0xf2] sm:$0xff] }
  0x47   :  { %2308 = vmatmul.mubr.f32.gmra.mrb[8].mxu1 %v1902_v23  ;;  %2944 = vmatprep.subr.bf16.mxu0 %v2943_v24  ;;  %v3487_v23 = vld [vmem:[%s3823_s0 + $0x50] sm:$0xff] }
  0x48   :  { %2532 = vmatmul.mubr.f32.gmra.mrb[8].mxu0 %v3384_v29  ;;  %2818 = vmatpush3.bf16.msra.mxu1 %v2815_v22  ;;  %v411_v22 = vld [vmem:[#allocation2 + $0x138] sm:$0xff]  ;;  %v1378_v63 = vld [vmem:[#allocation2 + $0x390] sm:$0xff] }
  0x49   :  { %2946 = vmatpush3.bf16.msra.mxu0 %v2943_v24  ;;  %2310 = vmatprep.mubr.f32.mxu1 %v3384_v29  ;;  %v1188_v24 = vld [vmem:[#allocation2 + $0x330] sm:$0xff]  ;;  %v2843_v28 = vpack.c.bf16 %v411_v22, %v410_v21  ;;  %v419_v21 = vld [vmem:[#allocation2 + $0x178] sm:$0xff] }
  0x4a   :  { %2534 = vmatprep.mubr.f32.mxu0 %v3389_v31  ;;  %2820 = vmatprep.subr.bf16.mxu1 %v2819_v30  ;;  %v3580_v22 = vld [vmem:[%s3823_s0 + $0xf0] sm:$0xff] }
  0x4b   :  { %2311 = vmatmul.mubr.f32.gmra.mrb[10].mxu1 %v3389_v31  ;;  %2948 = vmatprep.subr.bf16.mxu0 %v2947_v32 }
  0x4c   :  { %2535 = vmatmul.mubr.f32.gmra.mrb[10].mxu0 %v3396_v37  ;;  %2822 = vmatpush3.bf16.msra.mxu1 %v2819_v30  ;;  %v3505_v30 = vld [vmem:[%s3823_s0 + $0x72] sm:$0xff] }
  0x4d   :  { %2950 = vmatpush3.bf16.msra.mxu0 %v2947_v32  ;;  %2313 = vmatprep.mubr.f32.mxu1 %v3396_v37  ;;  %v2971_v32 = vpack.c.bf16 %v1189_v25, %v1188_v24  ;;  %v1196_v24 = vld [vmem:[#allocation2 + $0x370] sm:$0xff]  ;;  %v1197_v25 = vld [vmem:[#allocation2 + $0x378] sm:$0xff] }
  0x4e   :  { %2537 = vmatprep.mubr.f32.mxu0 %v3403_v39  ;;  %2824 = vmatprep.subr.bf16.mxu1 %v2823_v38 }
  0x4f   :  { %2314 = vmatmul.mubr.f32.gmra.mrb[12].mxu1 %v3403_v39  ;;  %2952 = vmatprep.subr.bf16.mxu0 %v2951_v40 }
  0x50   :  { %2538 = vmatmul.mubr.f32.gmra.mrb[12].mxu0 %v3410_v45  ;;  %2826 = vmatpush3.bf16.msra.mxu1 %v2823_v38  ;;  %v1191_v38 = vld [vmem:[#allocation2 + $0x348] sm:$0xff] }
  0x51   :  { %2954 = vmatpush3.bf16.msra.mxu0 %v2951_v40  ;;  %2316 = vmatprep.mubr.f32.mxu1 %v3410_v45  ;;  %v3517_v40 = vld [vmem:[%s3823_s0 + $0x82] sm:$0xff]  ;;  %v2975_v44 = vpack.c.bf16 %v1191_v38, %v1190_v36  ;;  %v2987_v36 = vpack.c.bf16 %v1197_v25, %v1196_v24 }
  0x52   :  { %2540 = vmatprep.mubr.f32.mxu0 %v3417_v47  ;;  %2828 = vmatprep.subr.bf16.mxu1 %v2827_v46  ;;  %v599_v38 = vld [vmem:[#allocation2 + $0x180] sm:$0xff]  ;;  %v1381_v24 = vld [vmem:[#allocation2 + $0x3a8] sm:$0xff] }
  0x53   :  { %2317 = vmatmul.mubr.f32.gmra.mrb[14].mxu1 %v3417_v47  ;;  %2956 = vmatprep.subr.bf16.mxu0 %v2955_v48 }
  0x54   :  { %2541 = vmatmul.mubr.f32.gmra.mrb[14].mxu0 %v3424_v53  ;;  %2830 = vmatpush3.bf16.msra.mxu1 %v2827_v46  ;;  %v414_v46 = vld [vmem:[#allocation2 + $0x150] sm:$0xff] }
  0x55   :  { %2958 = vmatpush3.bf16.msra.mxu0 %v2955_v48  ;;  %2351 = vmatprep.mubr.f32.mxu1 %v32_v54  ;;  %v415_v48 = vld [vmem:[#allocation2 + $0x158] sm:$0xff]  ;;  %v3544_v54 = vld [vmem:[%s3823_s0 + $0xc0] sm:$0xff] }
  0x56   :  { %2575 = vmatprep.mubr.f32.mxu0 %v3434_v56  ;;  %2832 = vmatprep.subr.bf16.mxu1 %v2831_v55 }
  0x57   :  { %2352 = vmatmul.mubr.f32.vlgmr.msra.gmra.mrb[0].mxu1 %v3440_v61  ;;  %2960 = vmatprep.subr.bf16.mxu0 %v2959_v57 }
  0x58   :  { %2576 = vmatmul.mubr.f32.vlgmr.msra.gmra.mrb[0].mxu0 %v3445_v1  ;;  %2834 = vmatpush3.bf16.msra.mxu1 %v2831_v55  ;;  %v2851_v55 = vpack.c.bf16 %v415_v48, %v414_v46  ;;  %v1377_v46 = vld [vmem:[#allocation2 + $0x388] sm:$0xff] }
  0x59   :  { %2962 = vmatpush3.bf16.msra.mxu0 %v2959_v57  ;;  %2354 = vmatprep.mubr.f32.mxu1 %v3451_v2  ;;  %v3550_v57 = vld [vmem:[%s3823_s0 + $0xd2] sm:$0xff]  ;;  %v3610_v48 = vld [vmem:[%s3823_s0 + $0x122] sm:$0xff] }
  0x5a   :  { %2578 = vmatprep.mubr.f32.mxu0 %v3457_v5  ;;  %2836 = vmatprep.subr.bf16.mxu1 %v2835_v3 }
  0x5b   :  { %2355 = vmatmul.mubr.f32.gmra.mrb[2].mxu1 %v3463_v10  ;;  %2964 = vmatprep.subr.bf16.mxu0 %v2963_v7 }
  0x5c   :  { %2579 = vmatmul.mubr.f32.gmra.mrb[2].mxu0 %v3469_v15  ;;  %2838 = vmatpush3.bf16.msra.mxu1 %v2835_v3  ;;  %v1194_v3 = vld [vmem:[#allocation2 + $0x360] sm:$0xff] }
  0x5d   :  { %2966 = vmatpush3.bf16.msra.mxu0 %v2963_v7  ;;  %2357 = vmatprep.mubr.f32.mxu1 %v3475_v16  ;;  %v1195_v7 = vld [vmem:[#allocation2 + $0x368] sm:$0xff] }
  0x5e   :  { %2581 = vmatprep.mubr.f32.mxu0 %v3481_v18  ;;  %2840 = vmatprep.subr.bf16.mxu1 %v2839_v17 }
  0x5f   :  { %2358 = vmatmul.mubr.f32.gmra.mrb[4].mxu1 %v3487_v23  ;;  %2968 = vmatprep.subr.bf16.mxu0 %v2967_v19 }
  0x60   :  { %2582 = vmatmul.mubr.f32.gmra.mrb[4].mxu0 %v3493_v26  ;;  %2842 = vmatpush3.bf16.msra.mxu1 %v2839_v17  ;;  %v2983_v17 = vpack.c.bf16 %v1195_v7, %v1194_v3  ;;  %v1379_v3 = vld [vmem:[#allocation2 + $0x398] sm:$0xff] }
  0x61   :  { %2970 = vmatpush3.bf16.msra.mxu0 %v2967_v19  ;;  %2360 = vmatprep.mubr.f32.mxu1 %v3499_v27  ;;  %v418_v19 = vld [vmem:[#allocation2 + $0x170] sm:$0xff] }
  0x62   :  { %2584 = vmatprep.mubr.f32.mxu0 %v3505_v30  ;;  %2844 = vmatprep.subr.bf16.mxu1 %v2843_v28  ;;  %v2859_v33 = vpack.c.bf16 %v419_v21, %v418_v19  ;;  %v604_v19 = vld [vmem:[#allocation2 + $0x1a8] sm:$0xff]  ;;  %v1380_v21 = vld [vmem:[#allocation2 + $0x3a0] sm:$0xff] }
  0x63   :  { %2361 = vmatmul.mubr.f32.gmra.mrb[6].mxu1 %v3511_v35  ;;  %2972 = vmatprep.subr.bf16.mxu0 %v2971_v32 }
  0x64   :  { %2585 = vmatmul.mubr.f32.gmra.mrb[6].mxu0 %v3517_v40  ;;  %2846 = vmatpush3.bf16.msra.mxu1 %v2843_v28  ;;  %v3586_v28 = vld [vmem:[%s3823_s0 + $0x102] sm:$0xff] }
  0x65   :  { %2974 = vmatpush3.bf16.msra.mxu0 %v2971_v32  ;;  %2363 = vmatprep.mubr.f32.mxu1 %v40_v41  ;;  %v3592_v32 = vld [vmem:[%s3823_s0 + $0x100] sm:$0xff]  ;;  %v600_v41 = vld [vmem:[#allocation2 + $0x188] sm:$0xff] }
  0x66   :  { %2587 = vmatprep.mubr.f32.mxu0 %v3527_v43  ;;  %2848 = vmatprep.subr.bf16.mxu1 %v2847_v42  ;;  %v2863_v51 = vpack.c.bf16 %v600_v41, %v599_v38  ;;  %v1382_v38 = vld [vmem:[#allocation2 + $0x3b0] sm:$0xff]  ;;  %v1383_v41 = vld [vmem:[#allocation2 + $0x3b8] sm:$0xff] }
  0x67   :  { %2364 = vmatmul.mubr.f32.gmra.mrb[8].mxu1 %v3533_v49  ;;  %2976 = vmatprep.subr.bf16.mxu0 %v2975_v44 }
  0x68   :  { %2588 = vmatmul.mubr.f32.gmra.mrb[8].mxu0 %v3538_v52  ;;  %2850 = vmatpush3.bf16.msra.mxu1 %v2847_v42  ;;  %v3604_v42 = vld [vmem:[%s3823_s0 + $0x110] sm:$0xff] }
  0x69   :  { %2978 = vmatpush3.bf16.msra.mxu0 %v2975_v44  ;;  %2366 = vmatprep.mubr.f32.mxu1 %v3544_v54  ;;  %v1376_v44 = vld [vmem:[#allocation2 + $0x380] sm:$0xff] }
  0x6a   :  { %2590 = vmatprep.mubr.f32.mxu0 %v3550_v57  ;;  %2852 = vmatprep.subr.bf16.mxu1 %v2851_v55 }
  0x6b   :  { %2367 = vmatmul.mubr.f32.gmra.mrb[10].mxu1 %v3556_v0  ;;  %2980 = vmatprep.subr.bf16.mxu0 %v2979_v58 }
  0x6c   :  { %2591 = vmatmul.mubr.f32.gmra.mrb[10].mxu0 %v3562_v8  ;;  %2854 = vmatpush3.bf16.msra.mxu1 %v2851_v55  ;;  %v2991_v55 = vpack.c.bf16 %v1377_v46, %v1376_v44  ;;  %v3631_v46 = vld [vmem:[%s3823_s0 + $0x80] sm:$0xff] }
  0x6d   :  { %2982 = vmatpush3.bf16.msra.mxu0 %v2979_v58  ;;  %2369 = vmatprep.mubr.f32.mxu1 %v3568_v9  ;;  %v601_v58 = vld [vmem:[#allocation2 + $0x190] sm:$0xff] }
  0x6e   :  { %2593 = vmatprep.mubr.f32.mxu0 %v3574_v13  ;;  %2856 = vmatprep.subr.bf16.mxu1 %v2855_v11  ;;  %v2867_v7 = vpack.c.bf16 %v602_v59, %v601_v58  ;;  %v1384_v58 = vld [vmem:[#allocation2 + $0x3c0] sm:$0xff]  ;;  %v1385_v59 = vld [vmem:[#allocation2 + $0x3c8] sm:$0xff] }
  0x6f   :  { %2370 = vmatmul.mubr.f32.gmra.mrb[12].mxu1 %v3580_v22  ;;  %2984 = vmatprep.subr.bf16.mxu0 %v2983_v17 }
  0x70   :  { %2594 = vmatmul.mubr.f32.gmra.mrb[12].mxu0 %v3586_v28  ;;  %2858 = vmatpush3.bf16.msra.mxu1 %v2855_v11  ;;  %v2995_v11 = vpack.c.bf16 %v1379_v3, %v1378_v63  ;;  %v1933_v63 = vld [vmem:[%s3823_s0 + $0x90] sm:$0xff]  ;;  %v395_v3 = vld [vmem:[%s3823_s0 + $0xa2] sm:$0xff] }
  0x71   :  { %2986 = vmatpush3.bf16.msra.mxu0 %v2983_v17  ;;  %2372 = vmatprep.mubr.f32.mxu1 %v3592_v32  ;;  %v603_v17 = vld [vmem:[#allocation2 + $0x1a0] sm:$0xff] }
  0x72   :  { %2596 = vmatprep.mubr.f32.mxu0 %v3598_v34  ;;  %2860 = vmatprep.subr.bf16.mxu1 %v2859_v33  ;;  %v2871_v25 = vpack.c.bf16 %v604_v19, %v603_v17  ;;  %v609_v17 = vld [vmem:[#allocation2 + $0x1d0] sm:$0xff]  ;;  %v610_v19 = vld [vmem:[#allocation2 + $0x1d8] sm:$0xff] }
  0x73   :  { %2373 = vmatmul.mubr.f32.gmra.mrb[14].mxu1 %v3604_v42  ;;  %2988 = vmatprep.subr.bf16.mxu0 %v2987_v36 }
  0x74   :  { %2597 = vmatmul.mubr.f32.gmra.mrb[14].mxu0 %v3610_v48  ;;  %2862 = vmatpush3.bf16.msra.mxu1 %v2859_v33  ;;  %v605_v33 = vld [vmem:[#allocation2 + $0x1b0] sm:$0xff] }
  0x75   :  { %2990 = vmatpush3.bf16.msra.mxu0 %v2987_v36  ;;  %2407 = vmatprep.mubr.f32.mxu1 %v387_v50  ;;  %v606_v36 = vld [vmem:[#allocation2 + $0x1b8] sm:$0xff]  ;;  %v3003_v50 = vpack.c.bf16 %v1383_v41, %v1382_v38  ;;  %v1388_v38 = vld [vmem:[#allocation2 + $0x3e0] sm:$0xff]  ;;  %v1389_v41 = vld [vmem:[#allocation2 + $0x3e8] sm:$0xff] }
  0x76   :  { %2631 = vmatprep.mubr.f32.mxu0 %v3451_v2  ;;  %2864 = vmatprep.subr.bf16.mxu1 %v2863_v51  ;;  %v2875_v44 = vpack.c.bf16 %v606_v36, %v605_v33  ;;  %v611_v33 = vld [vmem:[#allocation2 + $0x1e0] sm:$0xff]  ;;  %v612_v36 = vld [vmem:[#allocation2 + $0x1e8] sm:$0xff] }
  0x77   :  { %2408 = vmatmul.mubr.f32.vlgmr.msra.gmra.mrb[0].mxu1 %v3434_v56  ;;  %2992 = vmatprep.subr.bf16.mxu0 %v2991_v55  ;;  %v2999_v56 = vpack.c.bf16 %v1381_v24, %v1380_v21  ;;  %v1386_v21 = vld [vmem:[#allocation2 + $0x3d0] sm:$0xff]  ;;  %v1387_v24 = vld [vmem:[#allocation2 + $0x3d8] sm:$0xff] }
  0x78   :  { %2632 = vmatmul.mubr.f32.vlgmr.msra.gmra.mrb[0].mxu0 %v3463_v10  ;;  %2866 = vmatpush3.bf16.msra.mxu1 %v2863_v51  ;;  %v607_v51 = vld [vmem:[#allocation2 + $0x1c0] sm:$0xff] }
  0x79   :  { %2994 = vmatpush3.bf16.msra.mxu0 %v2991_v55  ;;  %2410 = vmatprep.mubr.f32.mxu1 %v3445_v1  ;;  %v608_v55 = vld [vmem:[#allocation2 + $0x1c8] sm:$0xff] }
  0x7a   :  { %2634 = vmatprep.mubr.f32.mxu0 %v3475_v16  ;;  %2868 = vmatprep.subr.bf16.mxu1 %v2867_v7 }
  0x7b   :  { %2411 = vmatmul.mubr.f32.gmra.mrb[2].mxu1 %v3457_v5  ;;  %2996 = vmatprep.subr.bf16.mxu0 %v2995_v11 }
  0x7c   :  { %2635 = vmatmul.mubr.f32.gmra.mrb[2].mxu0 %v3487_v23  ;;  %2870 = vmatpush3.bf16.msra.mxu1 %v2867_v7  ;;  %v2879_v7 = vpack.c.bf16 %v608_v55, %v607_v51  ;;  %v614_v51 = vld [vmem:[#allocation2 + $0x1f8] sm:$0xff]  ;;  %v1390_v55 = vld [vmem:[#allocation2 + $0x3f0] sm:$0xff] }
  0x7d   :  { %2998 = vmatpush3.bf16.msra.mxu0 %v2995_v11  ;;  %2413 = vmatprep.mubr.f32.mxu1 %v3469_v15  ;;  %v3007_v11 = vpack.c.bf16 %v1385_v59, %v1384_v58  ;;  %v1391_v58 = vld [vmem:[#allocation2 + $0x3f8] sm:$0xff] }
  0x7e   :  { %2637 = vmatprep.mubr.f32.mxu0 %v3499_v27  ;;  %2872 = vmatprep.subr.bf16.mxu1 %v2871_v25 }
  0x7f   :  { %2414 = vmatmul.mubr.f32.gmra.mrb[4].mxu1 %v3481_v18  ;;  %3000 = vmatprep.subr.bf16.mxu0 %v2999_v56 }
  0x80   :  { %2638 = vmatmul.mubr.f32.gmra.mrb[4].mxu0 %v3511_v35  ;;  %2874 = vmatpush3.bf16.msra.mxu1 %v2871_v25  ;;  %v2883_v25 = vpack.c.bf16 %v610_v19, %v609_v17  ;;  %v1941_v17 = vld [vmem:[%s3823_s0 + $0x130] sm:$0xff] }
  0x81   :  { %3002 = vmatpush3.bf16.msra.mxu0 %v2999_v56  ;;  %2416 = vmatprep.mubr.f32.mxu1 %v3493_v26  ;;  %v3011_v56 = vpack.c.bf16 %v1387_v24, %v1386_v21  ;;  %v1572_v21 = vld [vmem:[#allocation2 + $0x410] sm:$0xff]  ;;  %v1573_v24 = vld [vmem:[#allocation2 + $0x418] sm:$0xff] }
  0x82   :  { %2640 = vmatprep.mubr.f32.mxu0 %v3631_v46  ;;  %2876 = vmatprep.subr.bf16.mxu1 %v2875_v44 }
  0x83   :  { %2417 = vmatmul.mubr.f32.gmra.mrb[6].mxu1 %v3505_v30  ;;  %3004 = vmatprep.subr.bf16.mxu0 %v3003_v50 }
  0x84   :  { %2641 = vmatmul.mubr.f32.gmra.mrb[6].mxu0 %v1933_v63  ;;  %2878 = vmatpush3.bf16.msra.mxu1 %v2875_v44  ;;  %v2887_v44 = vpack.c.bf16 %v612_v36, %v611_v33  ;;  %v3656_v63 = vld [vmem:[%s3823_s0 + $0x120] sm:$0xff]  ;;  %v1575_v33 = vld [vmem:[#allocation2 + $0x428] sm:$0xff] }
  0x85   :  { %3006 = vmatpush3.bf16.msra.mxu0 %v3003_v50  ;;  %2419 = vmatprep.mubr.f32.mxu1 %v395_v3  ;;  %v613_v50 = vld [vmem:[#allocation2 + $0x1f0] sm:$0xff]  ;;  %v3019_v3 = vpack.c.bf16 %v1391_v58, %v1390_v55 }
  0x86   :  { %2643 = vmatprep.mubr.f32.mxu0 %v3544_v54  ;;  %2880 = vmatprep.subr.bf16.mxu1 %v2879_v7  ;;  %v2891_v59 = vpack.c.bf16 %v614_v51, %v613_v50 }
  0x87   :  { %2420 = vmatmul.mubr.f32.gmra.mrb[8].mxu1 %v3527_v43  ;;  %3008 = vmatprep.subr.bf16.mxu0 %v3007_v11  ;;  %v3015_v43 = vpack.c.bf16 %v1389_v41, %v1388_v38 }
  0x88   :  { %2644 = vmatmul.mubr.f32.gmra.mrb[8].mxu0 %v3556_v0  ;;  %2882 = vmatpush3.bf16.msra.mxu1 %v2879_v7  ;;  %v1570_v7 = vld [vmem:[#allocation2 + $0x400] sm:$0xff] }
  0x89   :  { %3010 = vmatpush3.bf16.msra.mxu0 %v3007_v11  ;;  %2422 = vmatprep.mubr.f32.mxu1 %v3538_v52  ;;  %v1571_v11 = vld [vmem:[#allocation2 + $0x408] sm:$0xff] }
  0x8a   :  { %2646 = vmatprep.mubr.f32.mxu0 %v3568_v9  ;;  %2884 = vmatprep.subr.bf16.mxu1 %v2883_v25  ;;  %v3023_v19 = vpack.c.bf16 %v1571_v11, %v1570_v7 }
  0x8b   :  { %2423 = vmatmul.mubr.f32.gmra.mrb[10].mxu1 %v3550_v57  ;;  %3012 = vmatprep.subr.bf16.mxu0 %v3011_v56 }
  0x8c   :  { %2647 = vmatmul.mubr.f32.gmra.mrb[10].mxu0 %v3580_v22  ;;  %2886 = vmatpush3.bf16.msra.mxu1 %v2883_v25  ;;  %v3027_v25 = vpack.c.bf16 %v1573_v24, %v1572_v21 }
  0x8d   :  { %3014 = vmatpush3.bf16.msra.mxu0 %v3011_v56  ;;  %2425 = vmatprep.mubr.f32.mxu1 %v3562_v8  ;;  %v1574_v56 = vld [vmem:[#allocation2 + $0x420] sm:$0xff] }
  0x8e   :  { %2649 = vmatprep.mubr.f32.mxu0 %v3592_v32  ;;  %2888 = vmatprep.subr.bf16.mxu1 %v2887_v44  ;;  %v3031_v36 = vpack.c.bf16 %v1575_v33, %v1574_v56 }
  0x8f   :  { %2426 = vmatmul.mubr.f32.gmra.mrb[12].mxu1 %v3574_v13  ;;  %3016 = vmatprep.subr.bf16.mxu0 %v3015_v43 }
  0x90   :  { %2650 = vmatmul.mubr.f32.gmra.mrb[12].mxu0 %v3604_v42  ;;  %2890 = vmatpush3.bf16.msra.mxu1 %v2887_v44 }
  0x91   :  { %3018 = vmatpush3.bf16.msra.mxu0 %v3015_v43  ;;  %2428 = vmatprep.mubr.f32.mxu1 %v3586_v28 }
  0x92   :  { %2652 = vmatprep.mubr.f32.mxu0 %v3656_v63  ;;  %2892 = vmatprep.subr.bf16.mxu1 %v2891_v59 }
  0x93   :  { %2429 = vmatmul.mubr.f32.gmra.mrb[14].mxu1 %v3598_v34  ;;  %3020 = vmatprep.subr.bf16.mxu0 %v3019_v3 }
  0x94   :  { %2653 = vmatmul.mubr.f32.gmra.mrb[14].mxu0 %v1941_v17  ;;  %2894 = vmatpush3.bf16.msra.mxu1 %v2891_v59  ;;  %v3736_v59 = vld [vmem:[%s3825_s2] ss:$0 sm:$0xff]  ;;  %s3279_s2 = smov [#allocation5]  }
  0x95   :  { %3022 = vmatpush3.bf16.msra.mxu0 %v3019_v3  ;;  %2463 = vmatprep.mubr.f32.mxu1 %v3440_v61  ;;  %v1577_v61 = vld [vmem:[#allocation2 + $0x438] sm:$0xff]  ;;  %s1852_s23 = sshll.u32 %s3279_s2, 4  ;;  %s1853_s23 = int_to_ptr.vmem [resolvable:$true] %s1852_s23 }
  0x96   :  { %2687 = vmatprep.mubr.f32.mxu0 %v3330_v60  ;;  %3024 = vmatprep.subr.bf16.mxu0 %v3023_v19  ;;  %v1576_v60 = vld [vmem:[#allocation2 + $0x430] sm:$0xff]  ;;  %s3226_s24 = scalar_lea.vmem %s1853_s23, 2048  ;;  %p3231_p9 = scmp.lt.s32.totalorder %s1853_s23, %s1853_s23 }
  0x97   :  { %2464 = vmatmul.mubr.f32.vlgmr.msra.gmra.mrb[0].mxu1 %v3451_v2  ;;  %3055 = vmatprep.subr.bf16.mxu1 %v3023_v19  ;;  %v1579_v2 = vld [vmem:[#allocation2 + $0x448] sm:$0xff]  ;;  %p3227_p8 = scmp.ne.s32.totalorder %s1853_s23, %s3226_s24  ;;  %p3232_p10 = scmp.lt.s32.totalorder %s3226_s24, %s3226_s24 }
  0x98   :  { %2688 = vmatmul.mubr.f32.vlgmr.msra.gmra.mrb[0].mxu0 %v3335_v62  ;;  %3063 = vmatpush3.bf16.msra.mxu1 %v3023_v19  ;;  %v3035_v62 = vpack.c.bf16 %v1577_v61, %v1576_v60 }
  0x99   :  { %3026 = vmatpush3.bf16.msra.mxu0 %v3023_v19  ;;  %2466 = vmatprep.mubr.f32.mxu1 %v3463_v10  ;;  %v1580_v10 = vld [vmem:[#allocation2 + $0x450] sm:$0xff]  ;;  %p3233_p11 = por %p3232_p10, %p3231_p9 }
  0x9a   :  { %2690 = vmatprep.mubr.f32.mxu0 %v3342_v4  ;;  %3028 = vmatprep.subr.bf16.mxu0 %v3027_v25  ;;  %v1578_v4 = vld [vmem:[#allocation2 + $0x440] sm:$0xff] }
  0x9b   :  { %2467 = vmatmul.mubr.f32.gmra.mrb[2].mxu1 %v3475_v16  ;;  %3056 = vmatprep.subr.bf16.mxu1 %v3027_v25  ;;  %v1581_v16 = vld [vmem:[#allocation2 + $0x458] sm:$0xff]  ;;  %p3234_p12 = pnand %p3233_p11, %p3227_p8 }
  0x9c   :  { %2691 = vmatmul.mubr.f32.gmra.mrb[2].mxu0 %v3349_v6  ;;  %3064 = vmatpush3.bf16.msra.mxu1 %v3027_v25  ;;  %v1949_v6 = vld [vmem:[%s3823_s0 + $0x91] sm:$0xff] }
  0x9d   :  { %3030 = vmatpush3.bf16.msra.mxu0 %v3027_v25  ;;  %2469 = vmatprep.mubr.f32.mxu1 %v3487_v23  ;;  %v1583_v23 = vld [vmem:[#allocation2 + $0x468] sm:$0xff] }
  0x9e   :  { %2693 = vmatprep.mubr.f32.mxu0 %v3356_v12  ;;  %3032 = vmatprep.subr.bf16.mxu0 %v3031_v36  ;;  %v3039_v12 = vpack.c.bf16 %v1579_v2, %v1578_v4 }
  0x9f   :  { %2470 = vmatmul.mubr.f32.gmra.mrb[4].mxu1 %v3499_v27  ;;  %3057 = vmatprep.subr.bf16.mxu1 %v3031_v36 }
  0xa0   :  { %2694 = vmatmul.mubr.f32.gmra.mrb[4].mxu0 %v3363_v14  ;;  %3065 = vmatpush3.bf16.msra.mxu1 %v3031_v36  ;;  %v3043_v14 = vpack.c.bf16 %v1581_v16, %v1580_v10 }
  0xa1   :  { %3034 = vmatpush3.bf16.msra.mxu0 %v3031_v36  ;;  %2472 = vmatprep.mubr.f32.mxu1 %v3511_v35  ;;  %v1585_v35 = vld [vmem:[#allocation2 + $0x478] sm:$0xff] }
  0xa2   :  { %2696 = vmatprep.mubr.f32.mxu0 %v3370_v20  ;;  %3036 = vmatprep.subr.bf16.mxu0 %v3035_v62  ;;  %v1582_v20 = vld [vmem:[#allocation2 + $0x460] sm:$0xff] }
  0xa3   :  { %2473 = vmatmul.mubr.f32.gmra.mrb[6].mxu1 %v3631_v46  ;;  %3058 = vmatprep.subr.bf16.mxu1 %v3035_v62  ;;  %v3047_v27 = vpack.c.bf16 %v1583_v23, %v1582_v20 }
  0xa4   :  { %2697 = vmatmul.mubr.f32.gmra.mrb[6].mxu0 %v1949_v6  ;;  %3066 = vmatpush3.bf16.msra.mxu1 %v3035_v62 }
  0xa5   :  { %3038 = vmatpush3.bf16.msra.mxu0 %v3035_v62  ;;  %2475 = vmatprep.mubr.f32.mxu1 %v3533_v49 }
  0xa6   :  { %2699 = vmatprep.mubr.f32.mxu0 %v3384_v29  ;;  %3040 = vmatprep.subr.bf16.mxu0 %v3039_v12  ;;  %v1584_v29 = vld [vmem:[#allocation2 + $0x470] sm:$0xff] }
  0xa7   :  { %2476 = vmatmul.mubr.f32.gmra.mrb[8].mxu1 %v3544_v54  ;;  %3059 = vmatprep.subr.bf16.mxu1 %v3039_v12 }
  0xa8   :  { %2700 = vmatmul.mubr.f32.gmra.mrb[8].mxu0 %v3389_v31  ;;  %3067 = vmatpush3.bf16.msra.mxu1 %v3039_v12  ;;  %v3051_v31 = vpack.c.bf16 %v1585_v35, %v1584_v29 }
  0xa9   :  { %3042 = vmatpush3.bf16.msra.mxu0 %v3039_v12  ;;  %2478 = vmatprep.mubr.f32.mxu1 %v3556_v0 }
  0xaa   :  { %2702 = vmatprep.mubr.f32.mxu0 %v3396_v37  ;;  %3044 = vmatprep.subr.bf16.mxu0 %v3043_v14  ;;  %v1957_v37 = vld [vmem:[%s3823_s0 + $0x131] sm:$0xff] }
  0xab   :  { %2479 = vmatmul.mubr.f32.gmra.mrb[10].mxu1 %v3568_v9  ;;  %3060 = vmatprep.subr.bf16.mxu1 %v3043_v14 }
  0xac   :  { %2703 = vmatmul.mubr.f32.gmra.mrb[10].mxu0 %v3403_v39  ;;  %3068 = vmatpush3.bf16.msra.mxu1 %v3043_v14  ;;  %v1973_v39 = vld [vmem:[%s3823_s0 + $0x132] sm:$0xff] }
  0xad   :  { %3046 = vmatpush3.bf16.msra.mxu0 %v3043_v14  ;;  %2481 = vmatprep.mubr.f32.mxu1 %v3580_v22 }
  0xae   :  { %2705 = vmatprep.mubr.f32.mxu0 %v3410_v45  ;;  %3048 = vmatprep.subr.bf16.mxu0 %v3047_v27  ;;  %v1965_v45 = vld [vmem:[%s3823_s0 + $0x92] sm:$0xff] }
  0xaf   :  { %2482 = vmatmul.mubr.f32.gmra.mrb[12].mxu1 %v3592_v32  ;;  %3061 = vmatprep.subr.bf16.mxu1 %v3047_v27 }
  0xb0   :  { %2706 = vmatmul.mubr.f32.gmra.mrb[12].mxu0 %v3417_v47  ;;  %3069 = vmatpush3.bf16.msra.mxu1 %v3047_v27 }
  0xb1   :  { %3050 = vmatpush3.bf16.msra.mxu0 %v3047_v27  ;;  %2484 = vmatprep.mubr.f32.mxu1 %v3604_v42 }
  0xb2   :  { %2708 = vmatprep.mubr.f32.mxu0 %v3424_v53  ;;  %3052 = vmatprep.subr.bf16.mxu0 %v3051_v31 }
  0xb3   :  { %2485 = vmatmul.mubr.f32.gmra.mrb[14].mxu1 %v3656_v63  ;;  %3062 = vmatprep.subr.bf16.mxu1 %v3051_v31 }
  0xb4   :  { %2709 = vmatmul.mubr.f32.gmra.mrb[14].mxu0 %v1957_v37  ;;  %3070 = vmatpush3.bf16.msra.mxu1 %v3051_v31 }
  0xb5   :  { %3054 = vmatpush3.bf16.msra.mxu0 %v3051_v31  ;;  %2743 = vmatprep.mubr.f32.mxu0 %v3445_v1 }
  0xb6   :  { %2755 = vmatprep.mubr.f32.mxu1 %v3538_v52 }
  0xb7   :  { %2756 = vmatmul.mubr.f32.vlgmr.msra.gmra.mrb[16].mxu1 %v3550_v57 }
  0xb8   :  { %2744 = vmatmul.mubr.f32.vlgmr.msra.gmra.mrb[0].mxu0 %v3457_v5  ;;  %2758 = vmatprep.mubr.f32.mxu1 %v3562_v8 }
  0xb9   :  { %2746 = vmatprep.mubr.f32.mxu0 %v3469_v15 }
  0xbb   :  { %2759 = vmatmul.mubr.f32.gmra.mrb[18].mxu1 %v3574_v13 }
  0xbc   :  { %2747 = vmatmul.mubr.f32.gmra.mrb[2].mxu0 %v3481_v18  ;;  %2761 = vmatprep.mubr.f32.mxu1 %v3586_v28 }
  0xbd   :  { %2749 = vmatprep.mubr.f32.mxu0 %v3493_v26 }
  0xbf   :  { %2762 = vmatmul.mubr.f32.gmra.mrb[20].mxu1 %v3598_v34 }
  0xc0   :  { %2750 = vmatmul.mubr.f32.gmra.mrb[4].mxu0 %v3505_v30  ;;  %2764 = vmatprep.mubr.f32.mxu1 %v3610_v48 }
  0xc1   :  { %2752 = vmatprep.mubr.f32.mxu0 %v3517_v40 }
  0xc3   :  { %2765 = vmatmul.mubr.f32.gmra.mrb[22].mxu1 %v1973_v39 }
  0xc4   :  { %2753 = vmatmul.mubr.f32.gmra.mrb[6].mxu0 %v1965_v45 }
 0x16a   :  { %v2465_v47 = vpop.f32.mrb[0].mxu1 }
 0x16b   :  { %v681_v53 = vpop.f32.mrb[1].mxu1 }
 0x16e   :  { %v2468_v1 = vpop.f32.mrb[2].mxu1 }
 0x16f   :  { %v691_v5 = vpop.f32.mrb[3].mxu1 }
 0x172   :  { %v3721_v15 = vpop.f32.mrb[4].mxu1 }
 0x173   :  { %v3723_v18 = vpop.f32.mrb[5].mxu1 }
 0x176   :  { %v3725_v26 = vpop.f32.mrb[6].mxu1 }
 0x177   :  { %v3727_v30 = vpop.f32.mrb[7].mxu1 }
 0x17a   :  { %v2477_v49 = vpop.f32.mrb[8].mxu1 }
 0x17b   :  { %v2701_v40 = vpop.f32.mrb[8].mxu0  ;;  %v721_v52 = vpop.f32.mrb[9].mxu1 }
 0x17c   :  { %v3079_v54 = vadd.f32 %v2701_v40, %v2477_v49  ;;  %v1498_v57 = vpop.f32.mrb[9].mxu0 }
 0x17d   :  { %v3081_v0 = vadd.f32 %v1498_v57, %v721_v52 }
 0x17e   :  { %v2480_v8 = vpop.f32.mrb[10].mxu1 }
 0x17f   :  { %v2704_v9 = vpop.f32.mrb[10].mxu0  ;;  %v731_v13 = vpop.f32.mrb[11].mxu1 }
 0x180   :  { %v3083_v22 = vadd.f32 %v2704_v9, %v2480_v8  ;;  %v1508_v28 = vpop.f32.mrb[11].mxu0 }
 0x181   :  { %v3085_v32 = vadd.f32 %v1508_v28, %v731_v13 }
 0x182   :  { %v2483_v34 = vpop.f32.mrb[12].mxu1 }
 0x183   :  { %v2707_v42 = vpop.f32.mrb[12].mxu0  ;;  %v741_v48 = vpop.f32.mrb[13].mxu1 }
 0x184   :  { %v3087_v46 = vadd.f32 %v2707_v42, %v2483_v34  ;;  %v1518_v38 = vpop.f32.mrb[13].mxu0 }
 0x185   :  { %v3089_v41 = vadd.f32 %v1518_v38, %v741_v48 }
 0x186   :  { %v2486_v44 = vpop.f32.mrb[14].mxu1 }
 0x187   :  { %v2710_v43 = vpop.f32.mrb[14].mxu0  ;;  %v751_v50 = vpop.f32.mrb[15].mxu1 }
 0x188   :  { %v3729_v51 = vadd.f32 %v2710_v43, %v2486_v44  ;;  %v1528_v55 = vpop.f32.mrb[15].mxu0 }
 0x189   :  { %v3731_v58 = vadd.f32 %v1528_v55, %v751_v50 }
 0x18a   :  { %v2757_v63 = vpop.f32.mrb[16].mxu1 }
 0x18b   :  { %v2745_v3 = vpop.f32.mrb[0].mxu0  ;;  %v3080_v7 = vadd.f32 %v3079_v54, %v2757_v63  ;;  %v1692_v11 = vpop.f32.mrb[17].mxu1 }
 0x18c   :  { %v3071_v17 = vadd.f32 %v2745_v3, %v2465_v47  ;;  %v1652_v19 = vpop.f32.mrb[1].mxu0  ;;  %v3082_v21 = vadd.f32 %v3081_v0, %v1692_v11 }
 0x18d   :  { %v3739_v24 = vadd.f32 %v3080_v7, %v3736_v59  ;;  %v3072_v25 = vadd.f32 %v1652_v19, %v681_v53 }
 0x18e   :  { %v1755_v56 = vadd.f32 %v3071_v17, %v3736_v59  ;;  %v3743_v33 = vadd.f32 %v3082_v21, %v3736_v59  ;;  %v2760_v36 = vpop.f32.mrb[18].mxu1 }
 0x18f   :  { %1779 = vst [vmem:[#allocation5 + $0x48] sm:$0xff] %v3739_v24  ;;  %v1754_v60 = vadd.f32 %v3072_v25, %v3736_v59  ;;  %v2748_v61 = vpop.f32.mrb[2].mxu0  ;;  %v3084_v62 = vadd.f32 %v3083_v22, %v2760_v36  ;;  %v1702_v4 = vpop.f32.mrb[19].mxu1 }
 0x190   :  { %1771 = vst [vmem:[#allocation5 + $0x8] sm:$0xff] %v1755_v56  ;;  %v1808_v2 = vmul.f32 %v1755_v56, %v1755_v56  ;;  %1778 = vst [vmem:[#allocation5 + $0x40] sm:$0xff] %v3743_v33  ;;  %v3073_v6 = vadd.f32 %v2748_v61, %v2468_v1  ;;  %v1662_v12 = vpop.f32.mrb[3].mxu0  ;;  %v3086_v10 = vadd.f32 %v3085_v32, %v1702_v4 }
 0x191   :  { %1770 = vst [vmem:[#allocation5] sm:$0xff] %v1754_v60  ;;  %v1786_v16 = vadd.f32 %v1755_v56, %v1754_v60  ;;  %v1807_v14 = vmul.f32 %v1754_v60, %v1754_v60  ;;  %v3749_v20 = vadd.f32 %v3084_v62, %v3736_v59  ;;  %v3074_v23 = vadd.f32 %v1662_v12, %v691_v5 }
 0x192   :  { %v1757_v27 = vadd.f32 %v3073_v6, %v3736_v59  ;;  %v3753_v29 = vadd.f32 %v3086_v10, %v3736_v59  ;;  %v2763_v35 = vpop.f32.mrb[20].mxu1 }
 0x193   :  { %v1823_v31 = vadd.f32 %v1808_v2, %v1807_v14  ;;  %1781 = vst [vmem:[#allocation5 + $0x58] sm:$0xff] %v3749_v20  ;;  %v1756_v37 = vadd.f32 %v3074_v23, %v3736_v59  ;;  %v2751_v39 = vpop.f32.mrb[4].mxu0  ;;  %v3088_v45 = vadd.f32 %v3087_v46, %v2763_v35  ;;  %v1712_v47 = vpop.f32.mrb[21].mxu1 }
 0x194   :  { %1773 = vst [vmem:[#allocation5 + $0x18] sm:$0xff] %v1757_v27  ;;  %1780 = vst [vmem:[#allocation5 + $0x50] sm:$0xff] %v3753_v29  ;;  %v3075_v53 = vadd.f32 %v2751_v39, %v3721_v15  ;;  %v1672_v1 = vpop.f32.mrb[5].mxu0  ;;  %v3090_v5 = vadd.f32 %v3089_v41, %v1712_v47  ;;  %v1810_v9 = vmul.f32 %v1757_v27, %v1757_v27 }
 0x195   :  { %1772 = vst [vmem:[#allocation5 + $0x10] sm:$0xff] %v1756_v37  ;;  %v1787_v49 = vadd.f32 %v1786_v16, %v1756_v37  ;;  %v1809_v40 = vmul.f32 %v1756_v37, %v1756_v37  ;;  %v3760_v52 = vadd.f32 %v3088_v45, %v3736_v59  ;;  %v3076_v54 = vadd.f32 %v1672_v1, %v3723_v18 }
 0x196   :  { %v1759_v57 = vadd.f32 %v3075_v53, %v3736_v59  ;;  %v3765_v0 = vadd.f32 %v3090_v5, %v3736_v59  ;;  %v2766_v8 = vpop.f32.mrb[22].mxu1 }
 0x197   :  { %v1824_v13 = vadd.f32 %v1823_v31, %v1809_v40  ;;  %1783 = vst [vmem:[#allocation5 + $0x68] sm:$0xff] %v3760_v52  ;;  %v1758_v15 = vadd.f32 %v3076_v54, %v3736_v59  ;;  %v1788_v22 = vadd.f32 %v1787_v49, %v1757_v27  ;;  %v2754_v28 = vpop.f32.mrb[6].mxu0  ;;  %v1722_v32 = vpop.f32.mrb[23].mxu1  ;;  %v3092_v34 = vadd.f32 %v3729_v51, %v2766_v8 }
 0x198   :  { %1775 = vst [vmem:[#allocation5 + $0x28] sm:$0xff] %v1759_v57  ;;  %1782 = vst [vmem:[#allocation5 + $0x60] sm:$0xff] %v3765_v0  ;;  %v3077_v18 = vadd.f32 %v2754_v28, %v3725_v26  ;;  %v1682_v42 = vpop.f32.mrb[7].mxu0  ;;  %v3094_v50 = vadd.f32 %v3731_v58, %v1722_v32  ;;  %v1812_v55 = vmul.f32 %v1759_v57, %v1759_v57 }
 0x199   :  { %1774 = vst [vmem:[#allocation5 + $0x20] sm:$0xff] %v1758_v15  ;;  %v1789_v48 = vadd.f32 %v1788_v22, %v1758_v15  ;;  %v1811_v46 = vmul.f32 %v1758_v15, %v1758_v15  ;;  %v1825_v38 = vadd.f32 %v1824_v13, %v1810_v9  ;;  %v3078_v41 = vadd.f32 %v1682_v42, %v3727_v30 }
 0x19a   :  { %v1761_v44 = vadd.f32 %v3077_v18, %v3736_v59  ;;  %v1769_v43 = vadd.f32 %v3092_v34, %v3736_v59  ;;  %v1768_v3 = vadd.f32 %v3094_v50, %v3736_v59 }
 0x19b   :  { %v1826_v63 = vadd.f32 %v1825_v38, %v1811_v46  ;;  %v1760_v26 = vadd.f32 %v3078_v41, %v3736_v59  ;;  %v1790_v51 = vadd.f32 %v1789_v48, %v1759_v57 }
 0x19c   :  { %1777 = vst [vmem:[#allocation5 + $0x38] sm:$0xff] %v1761_v44  ;;  %1785 = vst [vmem:[#allocation5 + $0x78] sm:$0xff] %v1769_v43  ;;  %v1814_v17 = vmul.f32 %v1761_v44, %v1761_v44 }
 0x19d   :  { %1776 = vst [vmem:[#allocation5 + $0x30] sm:$0xff] %v1760_v26  ;;  %v1791_v30 = vadd.f32 %v1790_v51, %v1760_v26  ;;  %v1813_v7 = vmul.f32 %v1760_v26, %v1760_v26  ;;  %v1827_v11 = vadd.f32 %v1826_v63, %v1812_v55  ;;  %1784 = vst [vmem:[#allocation5 + $0x70] sm:$0xff] %v1768_v3 }
 0x19f   :  { %v1792_v19 = vadd.f32 %v1791_v30, %v1761_v44  ;;  %v1828_v21 = vadd.f32 %v1827_v11, %v1813_v7 }
 0x1a0   :  { %3237 = shalt.err (!%p3234_p12)
}
 0x1a1   :  { %s3238_s1 = scalar_lea.hbm %s3826_s3, 2048 }
 0x1a2   :  { %p3239_p13 = scmp.ne.s32.totalorder %s3826_s3, %s3238_s1  ;;  %p3242_p0 = scmp.lt.u32.totalorder %s3238_s1, %s3826_s3 }
 0x1a4   :  { %p3244_p1 = pnand %p3242_p0, %p3239_p13 }
 0x1a6   :  { %3247 = shalt.err (!%p3244_p1)
}
 0x1a7   :  { %1858 = dma.vmem_to_hbm [thread:$0]  %s1853_s23, 2048, %s3826_s3, [#allocation4], %s3277_s25, %s3277_s25, %s3278_s26   ;;  %v1815_v58 = vmul.f32 %v3743_v33, %v3743_v33  ;;  %v1793_v59 = vadd.f32 %v1792_v19, %v3743_v33  ;;  %v1829_v25 = vadd.f32 %v1828_v21, %v1814_v17  ;;  %v1816_v56 = vmul.f32 %v3739_v24, %v3739_v24 }
 0x1a8   :  { %v1817_v61 = vmul.f32 %v3753_v29, %v3753_v29  ;;  %v1818_v2 = vmul.f32 %v3749_v20, %v3749_v20  ;;  %v1819_v33 = vmul.f32 %v3765_v0, %v3765_v0  ;;  %v1822_v31 = vmul.f32 %v1769_v43, %v1769_v43  ;;  %s3280_s3 = smov [#allocation6]  }
 0x1a9   :  { %v1794_v36 = vadd.f32 %v1793_v59, %v3739_v24  ;;  %v1830_v60 = vadd.f32 %v1829_v25, %v1815_v58  ;;  %v1820_v24 = vmul.f32 %v3760_v52, %v3760_v52  ;;  %s1865_s25 = sshll.u32 %s3280_s3, 4  ;;  %vm1844_vm0 = vcmask 1040384   ;;  %s1866_s25 = int_to_ptr.vmem [resolvable:$true] %s1865_s25 }
 0x1aa   :  { %s3248_s26 = scalar_lea.vmem %s1866_s25, 32  ;;  %p3253_p3 = scmp.lt.s32.totalorder %s1866_s25, %s1866_s25 }
 0x1ab   :  { %v1831_v62 = vadd.f32 %v1830_v60, %v1816_v56  ;;  %v1795_v4 = vadd.f32 %v1794_v36, %v3753_v29  ;;  %v1821_v29 = vmul.f32 %v1768_v3, %v1768_v3  ;;  %p3249_p2 = scmp.ne.s32.totalorder %s1866_s25, %s3248_s26  ;;  %p3254_p4 = scmp.lt.s32.totalorder %s3248_s26, %s3248_s26 }
 0x1ad   :  { %v1796_v6 = vadd.f32 %v1795_v4, %v3749_v20  ;;  %v1832_v12 = vadd.f32 %v1831_v62, %v1817_v61  ;;  %p3255_p5 = por %p3254_p4, %p3253_p3 }
 0x1af   :  { %v1797_v10 = vadd.f32 %v1796_v6, %v3765_v0  ;;  %v1833_v16 = vadd.f32 %v1832_v12, %v1818_v2  ;;  %p3256_p6 = pnand %p3255_p5, %p3249_p2 }
 0x1b1   :  { %v1798_v14 = vadd.f32 %v1797_v10, %v3760_v52  ;;  %v1834_v23 = vadd.f32 %v1833_v16, %v1819_v33 }
 0x1b3   :  { %v1799_v27 = vadd.f32 %v1798_v14, %v1768_v3  ;;  %v1835_v35 = vadd.f32 %v1834_v23, %v1820_v24 }
 0x1b5   :  { %v1800_v37 = vadd.f32 %v1799_v27, %v1769_v43  ;;  %v1836_v39 = vadd.f32 %v1835_v35, %v1821_v29 }
 0x1b7   :  { %v1801_v20 = vrot.slane %v1800_v37, 4  ;;  %v1837_v45 = vadd.f32 %v1836_v39, %v1822_v31 }
 0x1b9   :  { %v1802_v47 = vadd.f32 %v1801_v20, %v1800_v37  ;;  %v1838_v53 = vrot.slane %v1837_v45, 4 }
 0x1bb   :  { %v1803_v1 = vrot.slane %v1802_v47, 2  ;;  %v1839_v5 = vadd.f32 %v1838_v53, %v1837_v45 }
 0x1bd   :  { %v1804_v49 = vadd.f32 %v1803_v1, %v1802_v47  ;;  %v1840_v40 = vrot.slane %v1839_v5, 2 }
 0x1bf   :  { %v1805_v54 = vrot.slane %v1804_v49, 1  ;;  %v1841_v57 = vadd.f32 %v1840_v40, %v1839_v5 }
 0x1c1   :  { %v1842_v0 = vrot.slane %v1841_v57, 1  ;;  %v1806_v52 = vadd.f32 %v1805_v54, %v1804_v49 }
 0x1c3   :  { %v1843_v8 = vadd.f32 %v1842_v0, %v1841_v57 }
 0x1c5   :  { %v1845_v9 = vsel %vm1844_vm0, %v1806_v52, %v1843_v8 }
 0x1c6   :  { %1846 = vst [vmem:[#allocation6] sm:$0x3] %v1845_v9 }
 0x1c7   :  { %3259 = shalt.err (!%p3256_p6)
}
 0x1c8   :  { %s3260_s11 = scalar_lea.hbm %s3827_s4, 32 }
 0x1c9   :  { %p3261_p7 = scmp.ne.s32.totalorder %s3827_s4, %s3260_s11  ;;  %p3264_p8 = scmp.lt.u32.totalorder %s3260_s11, %s3827_s4 }
 0x1cb   :  { %p3266_p9 = pnand %p3264_p8, %p3261_p7 }
 0x1cd   :  { %3269 = shalt.err (!%p3266_p9)
}
 0x1ce   :  { %1868 = dma.vmem_to_hbm [thread:$0]  %s1866_s25, 32, %s3827_s4, [#allocation7]  }
 0x1cf   :  { %3272 = dma.done.wait [#allocation4], 2048  }
 0x1d0   :  { %3273 = vsyncadd [#allocation4], 4294965248 }
 0x1d1   :  { %3274 = dma.done.wait [#allocation7], 32  }
 0x1d2   :  { %3275 = vsyncadd [#allocation7], 4294967264 }
 0x1d3   :  { %1875 = vsyncpa [#allocation3], 1 }
 0x1d4   :  { %1876 = vsyncpa [#allocation4], 1 }
 0x1d5   :  { %1877 = vsyncpa [#allocation7], 1 }

</bundles_post_ra>
